<compile_context>
chip_gen: v7x
topology: tpu7x:2x2x1
jax: 0.10.0
libtpu: 0.0.40
codegen_flags: <defaults>
</compile_context>

<pallas_src>
import jax
import jax.numpy as jnp
import numpy as np
from jax.experimental import pallas as pl
from jax.experimental.pallas import tpu as pltpu

# ---------------- configuration (small, consistent with the module) ----------
VOCAB = 50
B = 2                 # batch
SEQ = 16              # bart_seq_len
HID = 32              # bart_hidden_size
C_OUT = 8             # conv_out_channels  (== BiLSTM sequence length)
KSZ = 3               # conv_kernel_size
DIL = 1               # conv_dilation
PAD = 0
STRIDE = 1
L_OUT = (SEQ + 2 * PAD - DIL * (KSZ - 1) - 1) // STRIDE + 1   # 14 == LSTM input size
BILSTM_IN = 16        # bilstm_in_features
HD = BILSTM_IN // 2   # LSTM hidden size per direction = 8
N_LABELS = 4          # no_out_labels
KHID = KSZ * HID      # 96  im2col contraction size
G4 = 4 * HD           # 32  gates per direction
G8 = 8 * HD           # 64  gates both directions


def _sigmoid(z):
    # 1/(1+exp(-z)) with the divide moved to the EUP (approx reciprocal).
    return pl.reciprocal(1.0 + jnp.exp(-z), approx=True)


def absa_head_kernel(xcolT_ref, wconv_ref, cb_ref, wih_ref, whh_ref, bias_ref,
                     fcw_ref, fcb_ref, out_ref):
    xcolT = xcolT_ref[...]     # [B, KSZ*HID, L_OUT]  im2col'd input (NCW windows)
    wconv = wconv_ref[...]     # [C_OUT, KSZ*HID]     flattened conv weight
    cb = cb_ref[...]           # [C_OUT, 1]
    wih = wih_ref[...]         # [L_OUT, 8*HD]  input proj, fwd|bwd, gate order i,f,o,g
    whh = whh_ref[...]         # [2*HD, 8*HD]   block-diagonal recurrent weight
    bias = bias_ref[...]       # [1, 8*HD]      fused (bih+bhh), both directions
    fcw = fcw_ref[...]         # [2*HD, N_LABELS]
    fcb = fcb_ref[...]         # [1, N_LABELS]

    # ---- Conv1d: one dense matmul per batch element (contraction = KSZ*HID) ----
    conv_rows = [jnp.dot(wconv, xcolT[b], preferred_element_type=jnp.float32) + cb
                 for b in range(B)]                       # each [C_OUT, L_OUT]
    conv_seq = jnp.concatenate(conv_rows, axis=0)         # [B*C_OUT, L_OUT] (time-major)

    # ---- Hoisted LSTM input projection for both directions (one matmul) -------
    gin = jnp.dot(conv_seq, wih, preferred_element_type=jnp.float32) + bias
    gin = gin.reshape(B, C_OUT, G8)                       # [B, T, 8*HD]

    # ---- Fused bidirectional recurrence (block-diagonal Whh) ------------------
    h_f = jnp.zeros((B, HD), jnp.float32)
    h_b = jnp.zeros((B, HD), jnp.float32)
    c_f = jnp.zeros((B, HD), jnp.float32)
    c_b = jnp.zeros((B, HD), jnp.float32)
    fwd = [None] * C_OUT
    bwd = [None] * C_OUT
    for s in range(C_OUT):
        H = jnp.concatenate([h_f, h_b], axis=-1)                       # [B, 2*HD]
        rec = jnp.dot(H, whh, preferred_element_type=jnp.float32)      # [B, 8*HD]
        gf = gin[:, s, 0:G4] + rec[:, 0:G4]                 # fwd gates at time s
        gb = gin[:, C_OUT - 1 - s, G4:G8] + rec[:, G4:G8]   # bwd gates at time T-1-s
        # gate order per direction: i, f, o, g
        sf = _sigmoid(gf[:, 0:3 * HD])
        sb = _sigmoid(gb[:, 0:3 * HD])
        c_f = sf[:, HD:2 * HD] * c_f + sf[:, 0:HD] * jnp.tanh(gf[:, 3 * HD:G4])
        c_b = sb[:, HD:2 * HD] * c_b + sb[:, 0:HD] * jnp.tanh(gb[:, 3 * HD:G4])
        h_f = sf[:, 2 * HD:3 * HD] * jnp.tanh(c_f)
        h_b = sb[:, 2 * HD:3 * HD] * jnp.tanh(c_b)
        fwd[s] = h_f
        bwd[C_OUT - 1 - s] = h_b

    # ---- Final Linear: single fused matmul ------------------------------------
    lstm_out = jnp.concatenate([jnp.stack(fwd, axis=1),
                                jnp.stack(bwd, axis=1)], axis=-1)      # [B, T, 2*HD]
    feats = lstm_out.reshape(B * C_OUT, 2 * HD)
    logits = jnp.dot(feats, fcw, preferred_element_type=jnp.float32) + fcb
    out_ref[...] = logits.reshape(B, C_OUT, N_LABELS)


def prepare_params(params):
    """One-time (numpy, outside jit) weight re-layout for the kernel."""
    (conv_w, conv_b, wih_f, whh_f, bih_f, bhh_f,
     wih_b, whh_b, bih_b, bhh_b, fc_w, fc_b) = [np.asarray(p, np.float32) for p in params]

    # Conv weight (C_OUT, HID, KSZ) -> (C_OUT, KSZ*HID) with index k*HID + h.
    wconv = np.transpose(conv_w, (0, 2, 1)).reshape(C_OUT, KHID)
    cb = conv_b.reshape(C_OUT, 1)

    # Gate-column permutation: PyTorch (i, f, g, o) -> (i, f, o, g).
    perm = np.concatenate([np.arange(0, HD), np.arange(HD, 2 * HD),
                           np.arange(3 * HD, 4 * HD), np.arange(2 * HD, 3 * HD)])

    wih_cat = np.concatenate([wih_f.T[:, perm], wih_b.T[:, perm]], axis=1)  # (L_OUT, 8*HD)

    whh_blk = np.zeros((2 * HD, G8), np.float32)          # block-diagonal recurrent weight
    whh_blk[0:HD, 0:G4] = whh_f.T[:, perm]
    whh_blk[HD:2 * HD, G4:G8] = whh_b.T[:, perm]

    bias_cat = np.concatenate([(bih_f + bhh_f)[perm],
                               (bih_b + bhh_b)[perm]]).reshape(1, G8)

    fcw = fc_w.T                                          # (2*HD, N_LABELS)
    fcb = fc_b.reshape(1, N_LABELS)

    return tuple(jnp.asarray(a) for a in
                 (wconv, cb, wih_cat, whh_blk, bias_cat, fcw, fcb))


@jax.jit
def absa_head_pallas(x_bsh, wconv, cb, wih_cat, whh_blk, bias_cat, fcw, fcb):
    """x_bsh: (B, SEQ, HID) BART last_hidden_state (dropout is identity in eval)."""
    # im2col (layout plumbing, fuses into one XLA copy under jit):
    # xcolT[b, k*HID + h, l] = x[b, l + k*DIL, h]
    x_ncw = jnp.transpose(x_bsh, (0, 2, 1))                             # (B, HID, SEQ)
    xcolT = jnp.concatenate([x_ncw[:, :, k * DIL:k * DIL + L_OUT]
                             for k in range(KSZ)], axis=1)              # (B, KSZ*HID, L_OUT)

    vmem = pl.BlockSpec(memory_space=pltpu.MemorySpace.VMEM)
    return pl.pallas_call(
        absa_head_kernel,
        out_shape=jax.ShapeDtypeStruct((B, C_OUT, N_LABELS), jnp.float32),
        in_specs=[vmem] * 8,
        out_specs=vmem,
    )(xcolT, wconv, cb, wih_cat, whh_blk, bias_cat, fcw, fcb)


def absa_head_reference(x_bsh, params):
    """Pure-JAX reference mirroring the PyTorch forward (for validation)."""
    (conv_w, conv_b, wih_f, whh_f, bih_f, bhh_f,
     wih_b, whh_b, bih_b, bhh_b, fc_w, fc_b) = params
    x = jnp.transpose(x_bsh, (0, 2, 1))                     # (B, HID, SEQ)
    conv = jnp.zeros((B, C_OUT, L_OUT), jnp.float32)
    for k in range(KSZ):
        xk = x[:, :, k * DIL:k * DIL + L_OUT]
        conv = conv + jnp.einsum('bhl,ch->bcl', xk, conv_w[:, :, k])
    conv = conv + conv_b[None, :, None]

    def step(x_t, h, c, wih, whh, bih, bhh):
        g = x_t @ wih.T + h @ whh.T + bih + bhh
        i = jax.nn.sigmoid(g[:, 0 * HD:1 * HD])
        f = jax.nn.sigmoid(g[:, 1 * HD:2 * HD])
        gg = jnp.tanh(g[:, 2 * HD:3 * HD])
        o = jax.nn.sigmoid(g[:, 3 * HD:4 * HD])
        c = f * c + i * gg
        h = o * jnp.tanh(c)
        return h, c

    zeros = jnp.zeros((B, HD), jnp.float32)
    h_f, c_f = zeros, zeros
    fwd = []
    for t in range(C_OUT):
        h_f, c_f = step(conv[:, t, :], h_f, c_f, wih_f, whh_f, bih_f, bhh_f)
        fwd.append(h_f)
    h_b, c_b = zeros, zeros
    bwd = [None] * C_OUT
    for t in range(C_OUT - 1, -1, -1):
        h_b, c_b = step(conv[:, t, :], h_b, c_b, wih_b, whh_b, bih_b, bhh_b)
        bwd[t] = h_b
    lstm_out = jnp.concatenate([jnp.stack(fwd, 1), jnp.stack(bwd, 1)], axis=-1)
    return lstm_out @ fc_w.T + fc_b


if __name__ == "__main__":
    key = jax.random.PRNGKey(0)
    ks = jax.random.split(key, 16)
    # Deterministic synthetic parameters (shapes follow the module __init__).
    emb_table = (jax.random.normal(ks[0], (VOCAB, HID)) * 0.5).astype(jnp.float32)
    conv_w = (jax.random.normal(ks[1], (C_OUT, HID, KSZ)) * 0.2).astype(jnp.float32)
    conv_b = (jax.random.normal(ks[2], (C_OUT,)) * 0.1).astype(jnp.float32)
    wih_f = (jax.random.normal(ks[3], (4 * HD, L_OUT)) * 0.2).astype(jnp.float32)
    whh_f = (jax.random.normal(ks[4], (4 * HD, HD)) * 0.2).astype(jnp.float32)
    bih_f = (jax.random.normal(ks[5], (4 * HD,)) * 0.1).astype(jnp.float32)
    bhh_f = (jax.random.normal(ks[6], (4 * HD,)) * 0.1).astype(jnp.float32)
    wih_b = (jax.random.normal(ks[7], (4 * HD, L_OUT)) * 0.2).astype(jnp.float32)
    whh_b = (jax.random.normal(ks[8], (4 * HD, HD)) * 0.2).astype(jnp.float32)
    bih_b = (jax.random.normal(ks[9], (4 * HD,)) * 0.1).astype(jnp.float32)
    bhh_b = (jax.random.normal(ks[10], (4 * HD,)) * 0.1).astype(jnp.float32)
    fc_w = (jax.random.normal(ks[11], (N_LABELS, BILSTM_IN)) * 0.3).astype(jnp.float32)
    fc_b = (jax.random.normal(ks[12], (N_LABELS,)) * 0.1).astype(jnp.float32)
    params = (conv_w, conv_b, wih_f, whh_f, bih_f, bhh_f,
              wih_b, whh_b, bih_b, bhh_b, fc_w, fc_b)

    ids = jax.random.randint(ks[13], (B, SEQ), 0, VOCAB)
    mask = jnp.ones((B, SEQ), jnp.float32)

    # TODO(synk): full BART encoder (self.bart) is out of scope for a single
    # kernel; replaced by a deterministic embedding lookup producing the same
    # (B, seq, hidden) last_hidden_state shape.
    embedded = emb_table[ids] * mask[..., None]
    # torch.nn.Dropout(p=0.3) is inference-mode identity here (module.eval()).
    x = embedded.astype(jnp.float32)

    prepped = prepare_params(params)       # one-time weight re-layout (outside jit)

    out = absa_head_pallas(x, *prepped)
    jax.block_until_ready(out)

    ref = absa_head_reference(x, params)
    assert out.shape == (B, C_OUT, N_LABELS)
    np.testing.assert_allclose(np.asarray(out), np.asarray(ref),
                               atol=5e-2, rtol=5e-2)
    print("KERNEL_OK")
</pallas_src>

<mosaic_0001>
module attributes {stable_mosaic.version = 11 : i64} {
  func.func @absa_head_kernel(%arg0: memref<2x96x14xf32, #tpu.memory_space<vmem>>, %arg1: memref<8x96xf32, #tpu.memory_space<vmem>>, %arg2: memref<8x1xf32, #tpu.memory_space<vmem>>, %arg3: memref<14x64xf32, #tpu.memory_space<vmem>>, %arg4: memref<16x64xf32, #tpu.memory_space<vmem>>, %arg5: memref<1x64xf32, #tpu.memory_space<vmem>>, %arg6: memref<16x4xf32, #tpu.memory_space<vmem>>, %arg7: memref<1x4xf32, #tpu.memory_space<vmem>>, %arg8: memref<2x8x4xf32, #tpu.memory_space<vmem>>) attributes {dimension_semantics = [], scalar_prefetch = 0 : i64, scratch_operands = 0 : i64, tpu.core_type = #tpu.core_type<tc>} {
    %c0 = arith.constant 0 : index
    %c0_0 = arith.constant 0 : index
    %c0_1 = arith.constant 0 : index
    %0 = vector.load %arg0[%c0, %c0_0, %c0_1] : memref<2x96x14xf32, #tpu.memory_space<vmem>>, vector<2x96x14xf32>
    %c0_2 = arith.constant 0 : index
    %c0_3 = arith.constant 0 : index
    %1 = vector.load %arg1[%c0_2, %c0_3] : memref<8x96xf32, #tpu.memory_space<vmem>>, vector<8x96xf32>
    %c0_4 = arith.constant 0 : index
    %c0_5 = arith.constant 0 : index
    %2 = vector.load %arg2[%c0_4, %c0_5] : memref<8x1xf32, #tpu.memory_space<vmem>>, vector<8x1xf32>
    %c0_6 = arith.constant 0 : index
    %c0_7 = arith.constant 0 : index
    %3 = vector.load %arg3[%c0_6, %c0_7] : memref<14x64xf32, #tpu.memory_space<vmem>>, vector<14x64xf32>
    %c0_8 = arith.constant 0 : index
    %c0_9 = arith.constant 0 : index
    %4 = vector.load %arg4[%c0_8, %c0_9] : memref<16x64xf32, #tpu.memory_space<vmem>>, vector<16x64xf32>
    %c0_10 = arith.constant 0 : index
    %c0_11 = arith.constant 0 : index
    %5 = vector.load %arg5[%c0_10, %c0_11] : memref<1x64xf32, #tpu.memory_space<vmem>>, vector<1x64xf32>
    %c0_12 = arith.constant 0 : index
    %c0_13 = arith.constant 0 : index
    %6 = vector.load %arg6[%c0_12, %c0_13] : memref<16x4xf32, #tpu.memory_space<vmem>>, vector<16x4xf32>
    %c0_14 = arith.constant 0 : index
    %c0_15 = arith.constant 0 : index
    %7 = vector.load %arg7[%c0_14, %c0_15] : memref<1x4xf32, #tpu.memory_space<vmem>>, vector<1x4xf32>
    %8 = vector.extract_strided_slice %0 {offsets = [0, 0, 0], sizes = [1, 96, 14], strides = [1, 1, 1]} : vector<2x96x14xf32> to vector<1x96x14xf32>
    %9 = vector.shape_cast %8 : vector<1x96x14xf32> to vector<96x14xf32>
    %cst = arith.constant dense<0.000000e+00> : vector<8x14xf32>
    %10 = tpu.matmul %1, %9, %cst {dimension_numbers = #tpu.dot_dimension_numbers<[1], [0], [0], [1], [0, 0, 1, 1], [], []>} : vector<8x96xf32>, vector<96x14xf32>, vector<8x14xf32> -> vector<8x14xf32>
    %11 = vector.broadcast %2 : vector<8x1xf32> to vector<8x14xf32>
    %12 = arith.addf %10, %11 : vector<8x14xf32>
    %13 = vector.extract_strided_slice %0 {offsets = [1, 0, 0], sizes = [1, 96, 14], strides = [1, 1, 1]} : vector<2x96x14xf32> to vector<1x96x14xf32>
    %14 = vector.shape_cast %13 : vector<1x96x14xf32> to vector<96x14xf32>
    %cst_16 = arith.constant dense<0.000000e+00> : vector<8x14xf32>
    %15 = tpu.matmul %1, %14, %cst_16 {dimension_numbers = #tpu.dot_dimension_numbers<[1], [0], [0], [1], [0, 0, 1, 1], [], []>} : vector<8x96xf32>, vector<96x14xf32>, vector<8x14xf32> -> vector<8x14xf32>
    %16 = vector.broadcast %2 : vector<8x1xf32> to vector<8x14xf32>
    %17 = arith.addf %15, %16 : vector<8x14xf32>
    %18 = tpu.concatenate %12, %17 in 0 : vector<8x14xf32>, vector<8x14xf32> -> vector<16x14xf32>
    %cst_17 = arith.constant dense<0.000000e+00> : vector<16x64xf32>
    %19 = tpu.matmul %18, %3, %cst_17 {dimension_numbers = #tpu.dot_dimension_numbers<[1], [0], [0], [1], [0, 0, 1, 1], [], []>} : vector<16x14xf32>, vector<14x64xf32>, vector<16x64xf32> -> vector<16x64xf32>
    %20 = vector.broadcast %5 : vector<1x64xf32> to vector<16x64xf32>
    %21 = arith.addf %19, %20 : vector<16x64xf32>
    %22 = vector.shape_cast %21 : vector<16x64xf32> to vector<2x8x64xf32>
    %cst_18 = arith.constant 0.000000e+00 : f32
    %23 = vector.broadcast %cst_18 : f32 to vector<2x8xf32>
    %cst_19 = arith.constant 0.000000e+00 : f32
    %24 = vector.broadcast %cst_19 : f32 to vector<2x8xf32>
    %cst_20 = arith.constant 0.000000e+00 : f32
    %25 = vector.broadcast %cst_20 : f32 to vector<2x8xf32>
    %cst_21 = arith.constant 0.000000e+00 : f32
    %26 = vector.broadcast %cst_21 : f32 to vector<2x8xf32>
    %27 = tpu.concatenate %23, %24 in 1 : vector<2x8xf32>, vector<2x8xf32> -> vector<2x16xf32>
    %cst_22 = arith.constant dense<0.000000e+00> : vector<2x64xf32>
    %28 = tpu.matmul %27, %4, %cst_22 {dimension_numbers = #tpu.dot_dimension_numbers<[1], [0], [0], [1], [0, 0, 1, 1], [], []>} : vector<2x16xf32>, vector<16x64xf32>, vector<2x64xf32> -> vector<2x64xf32>
    %29 = vector.extract_strided_slice %22 {offsets = [0, 0, 0], sizes = [2, 1, 32], strides = [1, 1, 1]} : vector<2x8x64xf32> to vector<2x1x32xf32>
    %30 = vector.shape_cast %29 : vector<2x1x32xf32> to vector<2x32xf32>
    %31 = vector.extract_strided_slice %28 {offsets = [0, 0], sizes = [2, 32], strides = [1, 1]} : vector<2x64xf32> to vector<2x32xf32>
    %32 = arith.addf %30, %31 : vector<2x32xf32>
    %33 = vector.extract_strided_slice %22 {offsets = [0, 7, 32], sizes = [2, 1, 32], strides = [1, 1, 1]} : vector<2x8x64xf32> to vector<2x1x32xf32>
    %34 = vector.shape_cast %33 : vector<2x1x32xf32> to vector<2x32xf32>
    %35 = vector.extract_strided_slice %28 {offsets = [0, 32], sizes = [2, 32], strides = [1, 1]} : vector<2x64xf32> to vector<2x32xf32>
    %36 = arith.addf %34, %35 : vector<2x32xf32>
    %37 = vector.extract_strided_slice %32 {offsets = [0, 0], sizes = [2, 24], strides = [1, 1]} : vector<2x32xf32> to vector<2x24xf32>
    %cst_23 = arith.constant 0.000000e+00 : f32
    %38 = vector.broadcast %cst_23 : f32 to vector<2x24xf32>
    %39 = arith.subf %38, %37 : vector<2x24xf32>
    %40 = math.exp %39 : vector<2x24xf32>
    %cst_24 = arith.constant 1.000000e+00 : f32
    %41 = vector.broadcast %cst_24 : f32 to vector<2x24xf32>
    %42 = arith.addf %41, %40 : vector<2x24xf32>
    %43 = tpu.reciprocal %42 {approx = true} : vector<2x24xf32> -> vector<2x24xf32>
    %44 = vector.extract_strided_slice %36 {offsets = [0, 0], sizes = [2, 24], strides = [1, 1]} : vector<2x32xf32> to vector<2x24xf32>
    %cst_25 = arith.constant 0.000000e+00 : f32
    %45 = vector.broadcast %cst_25 : f32 to vector<2x24xf32>
    %46 = arith.subf %45, %44 : vector<2x24xf32>
    %47 = math.exp %46 : vector<2x24xf32>
    %cst_26 = arith.constant 1.000000e+00 : f32
    %48 = vector.broadcast %cst_26 : f32 to vector<2x24xf32>
    %49 = arith.addf %48, %47 : vector<2x24xf32>
    %50 = tpu.reciprocal %49 {approx = true} : vector<2x24xf32> -> vector<2x24xf32>
    %51 = vector.extract_strided_slice %43 {offsets = [0, 8], sizes = [2, 8], strides = [1, 1]} : vector<2x24xf32> to vector<2x8xf32>
    %52 = arith.mulf %51, %25 : vector<2x8xf32>
    %53 = vector.extract_strided_slice %43 {offsets = [0, 0], sizes = [2, 8], strides = [1, 1]} : vector<2x24xf32> to vector<2x8xf32>
    %54 = vector.extract_strided_slice %32 {offsets = [0, 24], sizes = [2, 8], strides = [1, 1]} : vector<2x32xf32> to vector<2x8xf32>
    %55 = math.tanh %54 : vector<2x8xf32>
    %56 = arith.mulf %53, %55 : vector<2x8xf32>
    %57 = arith.addf %52, %56 : vector<2x8xf32>
    %58 = vector.extract_strided_slice %50 {offsets = [0, 8], sizes = [2, 8], strides = [1, 1]} : vector<2x24xf32> to vector<2x8xf32>
    %59 = arith.mulf %58, %26 : vector<2x8xf32>
    %60 = vector.extract_strided_slice %50 {offsets = [0, 0], sizes = [2, 8], strides = [1, 1]} : vector<2x24xf32> to vector<2x8xf32>
    %61 = vector.extract_strided_slice %36 {offsets = [0, 24], sizes = [2, 8], strides = [1, 1]} : vector<2x32xf32> to vector<2x8xf32>
    %62 = math.tanh %61 : vector<2x8xf32>
    %63 = arith.mulf %60, %62 : vector<2x8xf32>
    %64 = arith.addf %59, %63 : vector<2x8xf32>
    %65 = vector.extract_strided_slice %43 {offsets = [0, 16], sizes = [2, 8], strides = [1, 1]} : vector<2x24xf32> to vector<2x8xf32>
    %66 = math.tanh %57 : vector<2x8xf32>
    %67 = arith.mulf %65, %66 : vector<2x8xf32>
    %68 = vector.extract_strided_slice %50 {offsets = [0, 16], sizes = [2, 8], strides = [1, 1]} : vector<2x24xf32> to vector<2x8xf32>
    %69 = math.tanh %64 : vector<2x8xf32>
    %70 = arith.mulf %68, %69 : vector<2x8xf32>
    %71 = tpu.concatenate %67, %70 in 1 : vector<2x8xf32>, vector<2x8xf32> -> vector<2x16xf32>
    %cst_27 = arith.constant dense<0.000000e+00> : vector<2x64xf32>
    %72 = tpu.matmul %71, %4, %cst_27 {dimension_numbers = #tpu.dot_dimension_numbers<[1], [0], [0], [1], [0, 0, 1, 1], [], []>} : vector<2x16xf32>, vector<16x64xf32>, vector<2x64xf32> -> vector<2x64xf32>
    %73 = vector.extract_strided_slice %22 {offsets = [0, 1, 0], sizes = [2, 1, 32], strides = [1, 1, 1]} : vector<2x8x64xf32> to vector<2x1x32xf32>
    %74 = vector.shape_cast %73 : vector<2x1x32xf32> to vector<2x32xf32>
    %75 = vector.extract_strided_slice %72 {offsets = [0, 0], sizes = [2, 32], strides = [1, 1]} : vector<2x64xf32> to vector<2x32xf32>
    %76 = arith.addf %74, %75 : vector<2x32xf32>
    %77 = vector.extract_strided_slice %22 {offsets = [0, 6, 32], sizes = [2, 1, 32], strides = [1, 1, 1]} : vector<2x8x64xf32> to vector<2x1x32xf32>
    %78 = vector.shape_cast %77 : vector<2x1x32xf32> to vector<2x32xf32>
    %79 = vector.extract_strided_slice %72 {offsets = [0, 32], sizes = [2, 32], strides = [1, 1]} : vector<2x64xf32> to vector<2x32xf32>
    %80 = arith.addf %78, %79 : vector<2x32xf32>
    %81 = vector.extract_strided_slice %76 {offsets = [0, 0], sizes = [2, 24], strides = [1, 1]} : vector<2x32xf32> to vector<2x24xf32>
    %cst_28 = arith.constant 0.000000e+00 : f32
    %82 = vector.broadcast %cst_28 : f32 to vector<2x24xf32>
    %83 = arith.subf %82, %81 : vector<2x24xf32>
    %84 = math.exp %83 : vector<2x24xf32>
    %cst_29 = arith.constant 1.000000e+00 : f32
    %85 = vector.broadcast %cst_29 : f32 to vector<2x24xf32>
    %86 = arith.addf %85, %84 : vector<2x24xf32>
    %87 = tpu.reciprocal %86 {approx = true} : vector<2x24xf32> -> vector<2x24xf32>
    %88 = vector.extract_strided_slice %80 {offsets = [0, 0], sizes = [2, 24], strides = [1, 1]} : vector<2x32xf32> to vector<2x24xf32>
    %cst_30 = arith.constant 0.000000e+00 : f32
    %89 = vector.broadcast %cst_30 : f32 to vector<2x24xf32>
    %90 = arith.subf %89, %88 : vector<2x24xf32>
    %91 = math.exp %90 : vector<2x24xf32>
    %cst_31 = arith.constant 1.000000e+00 : f32
    %92 = vector.broadcast %cst_31 : f32 to vector<2x24xf32>
    %93 = arith.addf %92, %91 : vector<2x24xf32>
    %94 = tpu.reciprocal %93 {approx = true} : vector<2x24xf32> -> vector<2x24xf32>
    %95 = vector.extract_strided_slice %87 {offsets = [0, 8], sizes = [2, 8], strides = [1, 1]} : vector<2x24xf32> to vector<2x8xf32>
    %96 = arith.mulf %95, %57 : vector<2x8xf32>
    %97 = vector.extract_strided_slice %87 {offsets = [0, 0], sizes = [2, 8], strides = [1, 1]} : vector<2x24xf32> to vector<2x8xf32>
    %98 = vector.extract_strided_slice %76 {offsets = [0, 24], sizes = [2, 8], strides = [1, 1]} : vector<2x32xf32> to vector<2x8xf32>
    %99 = math.tanh %98 : vector<2x8xf32>
    %100 = arith.mulf %97, %99 : vector<2x8xf32>
    %101 = arith.addf %96, %100 : vector<2x8xf32>
    %102 = vector.extract_strided_slice %94 {offsets = [0, 8], sizes = [2, 8], strides = [1, 1]} : vector<2x24xf32> to vector<2x8xf32>
    %103 = arith.mulf %102, %64 : vector<2x8xf32>
    %104 = vector.extract_strided_slice %94 {offsets = [0, 0], sizes = [2, 8], strides = [1, 1]} : vector<2x24xf32> to vector<2x8xf32>
    %105 = vector.extract_strided_slice %80 {offsets = [0, 24], sizes = [2, 8], strides = [1, 1]} : vector<2x32xf32> to vector<2x8xf32>
    %106 = math.tanh %105 : vector<2x8xf32>
    %107 = arith.mulf %104, %106 : vector<2x8xf32>
    %108 = arith.addf %103, %107 : vector<2x8xf32>
    %109 = vector.extract_strided_slice %87 {offsets = [0, 16], sizes = [2, 8], strides = [1, 1]} : vector<2x24xf32> to vector<2x8xf32>
    %110 = math.tanh %101 : vector<2x8xf32>
    %111 = arith.mulf %109, %110 : vector<2x8xf32>
    %112 = vector.extract_strided_slice %94 {offsets = [0, 16], sizes = [2, 8], strides = [1, 1]} : vector<2x24xf32> to vector<2x8xf32>
    %113 = math.tanh %108 : vector<2x8xf32>
    %114 = arith.mulf %112, %113 : vector<2x8xf32>
    %115 = tpu.concatenate %111, %114 in 1 : vector<2x8xf32>, vector<2x8xf32> -> vector<2x16xf32>
    %cst_32 = arith.constant dense<0.000000e+00> : vector<2x64xf32>
    %116 = tpu.matmul %115, %4, %cst_32 {dimension_numbers = #tpu.dot_dimension_numbers<[1], [0], [0], [1], [0, 0, 1, 1], [], []>} : vector<2x16xf32>, vector<16x64xf32>, vector<2x64xf32> -> vector<2x64xf32>
    %117 = vector.extract_strided_slice %22 {offsets = [0, 2, 0], sizes = [2, 1, 32], strides = [1, 1, 1]} : vector<2x8x64xf32> to vector<2x1x32xf32>
    %118 = vector.shape_cast %117 : vector<2x1x32xf32> to vector<2x32xf32>
    %119 = vector.extract_strided_slice %116 {offsets = [0, 0], sizes = [2, 32], strides = [1, 1]} : vector<2x64xf32> to vector<2x32xf32>
    %120 = arith.addf %118, %119 : vector<2x32xf32>
    %121 = vector.extract_strided_slice %22 {offsets = [0, 5, 32], sizes = [2, 1, 32], strides = [1, 1, 1]} : vector<2x8x64xf32> to vector<2x1x32xf32>
    %122 = vector.shape_cast %121 : vector<2x1x32xf32> to vector<2x32xf32>
    %123 = vector.extract_strided_slice %116 {offsets = [0, 32], sizes = [2, 32], strides = [1, 1]} : vector<2x64xf32> to vector<2x32xf32>
    %124 = arith.addf %122, %123 : vector<2x32xf32>
    %125 = vector.extract_strided_slice %120 {offsets = [0, 0], sizes = [2, 24], strides = [1, 1]} : vector<2x32xf32> to vector<2x24xf32>
    %cst_33 = arith.constant 0.000000e+00 : f32
    %126 = vector.broadcast %cst_33 : f32 to vector<2x24xf32>
    %127 = arith.subf %126, %125 : vector<2x24xf32>
    %128 = math.exp %127 : vector<2x24xf32>
    %cst_34 = arith.constant 1.000000e+00 : f32
    %129 = vector.broadcast %cst_34 : f32 to vector<2x24xf32>
    %130 = arith.addf %129, %128 : vector<2x24xf32>
    %131 = tpu.reciprocal %130 {approx = true} : vector<2x24xf32> -> vector<2x24xf32>
    %132 = vector.extract_strided_slice %124 {offsets = [0, 0], sizes = [2, 24], strides = [1, 1]} : vector<2x32xf32> to vector<2x24xf32>
    %cst_35 = arith.constant 0.000000e+00 : f32
    %133 = vector.broadcast %cst_35 : f32 to vector<2x24xf32>
    %134 = arith.subf %133, %132 : vector<2x24xf32>
    %135 = math.exp %134 : vector<2x24xf32>
    %cst_36 = arith.constant 1.000000e+00 : f32
    %136 = vector.broadcast %cst_36 : f32 to vector<2x24xf32>
    %137 = arith.addf %136, %135 : vector<2x24xf32>
    %138 = tpu.reciprocal %137 {approx = true} : vector<2x24xf32> -> vector<2x24xf32>
    %139 = vector.extract_strided_slice %131 {offsets = [0, 8], sizes = [2, 8], strides = [1, 1]} : vector<2x24xf32> to vector<2x8xf32>
    %140 = arith.mulf %139, %101 : vector<2x8xf32>
    %141 = vector.extract_strided_slice %131 {offsets = [0, 0], sizes = [2, 8], strides = [1, 1]} : vector<2x24xf32> to vector<2x8xf32>
    %142 = vector.extract_strided_slice %120 {offsets = [0, 24], sizes = [2, 8], strides = [1, 1]} : vector<2x32xf32> to vector<2x8xf32>
    %143 = math.tanh %142 : vector<2x8xf32>
    %144 = arith.mulf %141, %143 : vector<2x8xf32>
    %145 = arith.addf %140, %144 : vector<2x8xf32>
    %146 = vector.extract_strided_slice %138 {offsets = [0, 8], sizes = [2, 8], strides = [1, 1]} : vector<2x24xf32> to vector<2x8xf32>
    %147 = arith.mulf %146, %108 : vector<2x8xf32>
    %148 = vector.extract_strided_slice %138 {offsets = [0, 0], sizes = [2, 8], strides = [1, 1]} : vector<2x24xf32> to vector<2x8xf32>
    %149 = vector.extract_strided_slice %124 {offsets = [0, 24], sizes = [2, 8], strides = [1, 1]} : vector<2x32xf32> to vector<2x8xf32>
    %150 = math.tanh %149 : vector<2x8xf32>
    %151 = arith.mulf %148, %150 : vector<2x8xf32>
    %152 = arith.addf %147, %151 : vector<2x8xf32>
    %153 = vector.extract_strided_slice %131 {offsets = [0, 16], sizes = [2, 8], strides = [1, 1]} : vector<2x24xf32> to vector<2x8xf32>
    %154 = math.tanh %145 : vector<2x8xf32>
    %155 = arith.mulf %153, %154 : vector<2x8xf32>
    %156 = vector.extract_strided_slice %138 {offsets = [0, 16], sizes = [2, 8], strides = [1, 1]} : vector<2x24xf32> to vector<2x8xf32>
    %157 = math.tanh %152 : vector<2x8xf32>
    %158 = arith.mulf %156, %157 : vector<2x8xf32>
    %159 = tpu.concatenate %155, %158 in 1 : vector<2x8xf32>, vector<2x8xf32> -> vector<2x16xf32>
    %cst_37 = arith.constant dense<0.000000e+00> : vector<2x64xf32>
    %160 = tpu.matmul %159, %4, %cst_37 {dimension_numbers = #tpu.dot_dimension_numbers<[1], [0], [0], [1], [0, 0, 1, 1], [], []>} : vector<2x16xf32>, vector<16x64xf32>, vector<2x64xf32> -> vector<2x64xf32>
    %161 = vector.extract_strided_slice %22 {offsets = [0, 3, 0], sizes = [2, 1, 32], strides = [1, 1, 1]} : vector<2x8x64xf32> to vector<2x1x32xf32>
    %162 = vector.shape_cast %161 : vector<2x1x32xf32> to vector<2x32xf32>
    %163 = vector.extract_strided_slice %160 {offsets = [0, 0], sizes = [2, 32], strides = [1, 1]} : vector<2x64xf32> to vector<2x32xf32>
    %164 = arith.addf %162, %163 : vector<2x32xf32>
    %165 = vector.extract_strided_slice %22 {offsets = [0, 4, 32], sizes = [2, 1, 32], strides = [1, 1, 1]} : vector<2x8x64xf32> to vector<2x1x32xf32>
    %166 = vector.shape_cast %165 : vector<2x1x32xf32> to vector<2x32xf32>
    %167 = vector.extract_strided_slice %160 {offsets = [0, 32], sizes = [2, 32], strides = [1, 1]} : vector<2x64xf32> to vector<2x32xf32>
    %168 = arith.addf %166, %167 : vector<2x32xf32>
    %169 = vector.extract_strided_slice %164 {offsets = [0, 0], sizes = [2, 24], strides = [1, 1]} : vector<2x32xf32> to vector<2x24xf32>
    %cst_38 = arith.constant 0.000000e+00 : f32
    %170 = vector.broadcast %cst_38 : f32 to vector<2x24xf32>
    %171 = arith.subf %170, %169 : vector<2x24xf32>
    %172 = math.exp %171 : vector<2x24xf32>
    %cst_39 = arith.constant 1.000000e+00 : f32
    %173 = vector.broadcast %cst_39 : f32 to vector<2x24xf32>
    %174 = arith.addf %173, %172 : vector<2x24xf32>
    %175 = tpu.reciprocal %174 {approx = true} : vector<2x24xf32> -> vector<2x24xf32>
    %176 = vector.extract_strided_slice %168 {offsets = [0, 0], sizes = [2, 24], strides = [1, 1]} : vector<2x32xf32> to vector<2x24xf32>
    %cst_40 = arith.constant 0.000000e+00 : f32
    %177 = vector.broadcast %cst_40 : f32 to vector<2x24xf32>
    %178 = arith.subf %177, %176 : vector<2x24xf32>
    %179 = math.exp %178 : vector<2x24xf32>
    %cst_41 = arith.constant 1.000000e+00 : f32
    %180 = vector.broadcast %cst_41 : f32 to vector<2x24xf32>
    %181 = arith.addf %180, %179 : vector<2x24xf32>
    %182 = tpu.reciprocal %181 {approx = true} : vector<2x24xf32> -> vector<2x24xf32>
    %183 = vector.extract_strided_slice %175 {offsets = [0, 8], sizes = [2, 8], strides = [1, 1]} : vector<2x24xf32> to vector<2x8xf32>
    %184 = arith.mulf %183, %145 : vector<2x8xf32>
    %185 = vector.extract_strided_slice %175 {offsets = [0, 0], sizes = [2, 8], strides = [1, 1]} : vector<2x24xf32> to vector<2x8xf32>
    %186 = vector.extract_strided_slice %164 {offsets = [0, 24], sizes = [2, 8], strides = [1, 1]} : vector<2x32xf32> to vector<2x8xf32>
    %187 = math.tanh %186 : vector<2x8xf32>
    %188 = arith.mulf %185, %187 : vector<2x8xf32>
    %189 = arith.addf %184, %188 : vector<2x8xf32>
    %190 = vector.extract_strided_slice %182 {offsets = [0, 8], sizes = [2, 8], strides = [1, 1]} : vector<2x24xf32> to vector<2x8xf32>
    %191 = arith.mulf %190, %152 : vector<2x8xf32>
    %192 = vector.extract_strided_slice %182 {offsets = [0, 0], sizes = [2, 8], strides = [1, 1]} : vector<2x24xf32> to vector<2x8xf32>
    %193 = vector.extract_strided_slice %168 {offsets = [0, 24], sizes = [2, 8], strides = [1, 1]} : vector<2x32xf32> to vector<2x8xf32>
    %194 = math.tanh %193 : vector<2x8xf32>
    %195 = arith.mulf %192, %194 : vector<2x8xf32>
    %196 = arith.addf %191, %195 : vector<2x8xf32>
    %197 = vector.extract_strided_slice %175 {offsets = [0, 16], sizes = [2, 8], strides = [1, 1]} : vector<2x24xf32> to vector<2x8xf32>
    %198 = math.tanh %189 : vector<2x8xf32>
    %199 = arith.mulf %197, %198 : vector<2x8xf32>
    %200 = vector.extract_strided_slice %182 {offsets = [0, 16], sizes = [2, 8], strides = [1, 1]} : vector<2x24xf32> to vector<2x8xf32>
    %201 = math.tanh %196 : vector<2x8xf32>
    %202 = arith.mulf %200, %201 : vector<2x8xf32>
    %203 = tpu.concatenate %199, %202 in 1 : vector<2x8xf32>, vector<2x8xf32> -> vector<2x16xf32>
    %cst_42 = arith.constant dense<0.000000e+00> : vector<2x64xf32>
    %204 = tpu.matmul %203, %4, %cst_42 {dimension_numbers = #tpu.dot_dimension_numbers<[1], [0], [0], [1], [0, 0, 1, 1], [], []>} : vector<2x16xf32>, vector<16x64xf32>, vector<2x64xf32> -> vector<2x64xf32>
    %205 = vector.extract_strided_slice %22 {offsets = [0, 4, 0], sizes = [2, 1, 32], strides = [1, 1, 1]} : vector<2x8x64xf32> to vector<2x1x32xf32>
    %206 = vector.shape_cast %205 : vector<2x1x32xf32> to vector<2x32xf32>
    %207 = vector.extract_strided_slice %204 {offsets = [0, 0], sizes = [2, 32], strides = [1, 1]} : vector<2x64xf32> to vector<2x32xf32>
    %208 = arith.addf %206, %207 : vector<2x32xf32>
    %209 = vector.extract_strided_slice %22 {offsets = [0, 3, 32], sizes = [2, 1, 32], strides = [1, 1, 1]} : vector<2x8x64xf32> to vector<2x1x32xf32>
    %210 = vector.shape_cast %209 : vector<2x1x32xf32> to vector<2x32xf32>
    %211 = vector.extract_strided_slice %204 {offsets = [0, 32], sizes = [2, 32], strides = [1, 1]} : vector<2x64xf32> to vector<2x32xf32>
    %212 = arith.addf %210, %211 : vector<2x32xf32>
    %213 = vector.extract_strided_slice %208 {offsets = [0, 0], sizes = [2, 24], strides = [1, 1]} : vector<2x32xf32> to vector<2x24xf32>
    %cst_43 = arith.constant 0.000000e+00 : f32
    %214 = vector.broadcast %cst_43 : f32 to vector<2x24xf32>
    %215 = arith.subf %214, %213 : vector<2x24xf32>
    %216 = math.exp %215 : vector<2x24xf32>
    %cst_44 = arith.constant 1.000000e+00 : f32
    %217 = vector.broadcast %cst_44 : f32 to vector<2x24xf32>
    %218 = arith.addf %217, %216 : vector<2x24xf32>
    %219 = tpu.reciprocal %218 {approx = true} : vector<2x24xf32> -> vector<2x24xf32>
    %220 = vector.extract_strided_slice %212 {offsets = [0, 0], sizes = [2, 24], strides = [1, 1]} : vector<2x32xf32> to vector<2x24xf32>
    %cst_45 = arith.constant 0.000000e+00 : f32
    %221 = vector.broadcast %cst_45 : f32 to vector<2x24xf32>
    %222 = arith.subf %221, %220 : vector<2x24xf32>
    %223 = math.exp %222 : vector<2x24xf32>
    %cst_46 = arith.constant 1.000000e+00 : f32
    %224 = vector.broadcast %cst_46 : f32 to vector<2x24xf32>
    %225 = arith.addf %224, %223 : vector<2x24xf32>
    %226 = tpu.reciprocal %225 {approx = true} : vector<2x24xf32> -> vector<2x24xf32>
    %227 = vector.extract_strided_slice %219 {offsets = [0, 8], sizes = [2, 8], strides = [1, 1]} : vector<2x24xf32> to vector<2x8xf32>
    %228 = arith.mulf %227, %189 : vector<2x8xf32>
    %229 = vector.extract_strided_slice %219 {offsets = [0, 0], sizes = [2, 8], strides = [1, 1]} : vector<2x24xf32> to vector<2x8xf32>
    %230 = vector.extract_strided_slice %208 {offsets = [0, 24], sizes = [2, 8], strides = [1, 1]} : vector<2x32xf32> to vector<2x8xf32>
    %231 = math.tanh %230 : vector<2x8xf32>
    %232 = arith.mulf %229, %231 : vector<2x8xf32>
    %233 = arith.addf %228, %232 : vector<2x8xf32>
    %234 = vector.extract_strided_slice %226 {offsets = [0, 8], sizes = [2, 8], strides = [1, 1]} : vector<2x24xf32> to vector<2x8xf32>
    %235 = arith.mulf %234, %196 : vector<2x8xf32>
    %236 = vector.extract_strided_slice %226 {offsets = [0, 0], sizes = [2, 8], strides = [1, 1]} : vector<2x24xf32> to vector<2x8xf32>
    %237 = vector.extract_strided_slice %212 {offsets = [0, 24], sizes = [2, 8], strides = [1, 1]} : vector<2x32xf32> to vector<2x8xf32>
    %238 = math.tanh %237 : vector<2x8xf32>
    %239 = arith.mulf %236, %238 : vector<2x8xf32>
    %240 = arith.addf %235, %239 : vector<2x8xf32>
    %241 = vector.extract_strided_slice %219 {offsets = [0, 16], sizes = [2, 8], strides = [1, 1]} : vector<2x24xf32> to vector<2x8xf32>
    %242 = math.tanh %233 : vector<2x8xf32>
    %243 = arith.mulf %241, %242 : vector<2x8xf32>
    %244 = vector.extract_strided_slice %226 {offsets = [0, 16], sizes = [2, 8], strides = [1, 1]} : vector<2x24xf32> to vector<2x8xf32>
    %245 = math.tanh %240 : vector<2x8xf32>
    %246 = arith.mulf %244, %245 : vector<2x8xf32>
    %247 = tpu.concatenate %243, %246 in 1 : vector<2x8xf32>, vector<2x8xf32> -> vector<2x16xf32>
    %cst_47 = arith.constant dense<0.000000e+00> : vector<2x64xf32>
    %248 = tpu.matmul %247, %4, %cst_47 {dimension_numbers = #tpu.dot_dimension_numbers<[1], [0], [0], [1], [0, 0, 1, 1], [], []>} : vector<2x16xf32>, vector<16x64xf32>, vector<2x64xf32> -> vector<2x64xf32>
    %249 = vector.extract_strided_slice %22 {offsets = [0, 5, 0], sizes = [2, 1, 32], strides = [1, 1, 1]} : vector<2x8x64xf32> to vector<2x1x32xf32>
    %250 = vector.shape_cast %249 : vector<2x1x32xf32> to vector<2x32xf32>
    %251 = vector.extract_strided_slice %248 {offsets = [0, 0], sizes = [2, 32], strides = [1, 1]} : vector<2x64xf32> to vector<2x32xf32>
    %252 = arith.addf %250, %251 : vector<2x32xf32>
    %253 = vector.extract_strided_slice %22 {offsets = [0, 2, 32], sizes = [2, 1, 32], strides = [1, 1, 1]} : vector<2x8x64xf32> to vector<2x1x32xf32>
    %254 = vector.shape_cast %253 : vector<2x1x32xf32> to vector<2x32xf32>
    %255 = vector.extract_strided_slice %248 {offsets = [0, 32], sizes = [2, 32], strides = [1, 1]} : vector<2x64xf32> to vector<2x32xf32>
    %256 = arith.addf %254, %255 : vector<2x32xf32>
    %257 = vector.extract_strided_slice %252 {offsets = [0, 0], sizes = [2, 24], strides = [1, 1]} : vector<2x32xf32> to vector<2x24xf32>
    %cst_48 = arith.constant 0.000000e+00 : f32
    %258 = vector.broadcast %cst_48 : f32 to vector<2x24xf32>
    %259 = arith.subf %258, %257 : vector<2x24xf32>
    %260 = math.exp %259 : vector<2x24xf32>
    %cst_49 = arith.constant 1.000000e+00 : f32
    %261 = vector.broadcast %cst_49 : f32 to vector<2x24xf32>
    %262 = arith.addf %261, %260 : vector<2x24xf32>
    %263 = tpu.reciprocal %262 {approx = true} : vector<2x24xf32> -> vector<2x24xf32>
    %264 = vector.extract_strided_slice %256 {offsets = [0, 0], sizes = [2, 24], strides = [1, 1]} : vector<2x32xf32> to vector<2x24xf32>
    %cst_50 = arith.constant 0.000000e+00 : f32
    %265 = vector.broadcast %cst_50 : f32 to vector<2x24xf32>
    %266 = arith.subf %265, %264 : vector<2x24xf32>
    %267 = math.exp %266 : vector<2x24xf32>
    %cst_51 = arith.constant 1.000000e+00 : f32
    %268 = vector.broadcast %cst_51 : f32 to vector<2x24xf32>
    %269 = arith.addf %268, %267 : vector<2x24xf32>
    %270 = tpu.reciprocal %269 {approx = true} : vector<2x24xf32> -> vector<2x24xf32>
    %271 = vector.extract_strided_slice %263 {offsets = [0, 8], sizes = [2, 8], strides = [1, 1]} : vector<2x24xf32> to vector<2x8xf32>
    %272 = arith.mulf %271, %233 : vector<2x8xf32>
    %273 = vector.extract_strided_slice %263 {offsets = [0, 0], sizes = [2, 8], strides = [1, 1]} : vector<2x24xf32> to vector<2x8xf32>
    %274 = vector.extract_strided_slice %252 {offsets = [0, 24], sizes = [2, 8], strides = [1, 1]} : vector<2x32xf32> to vector<2x8xf32>
    %275 = math.tanh %274 : vector<2x8xf32>
    %276 = arith.mulf %273, %275 : vector<2x8xf32>
    %277 = arith.addf %272, %276 : vector<2x8xf32>
    %278 = vector.extract_strided_slice %270 {offsets = [0, 8], sizes = [2, 8], strides = [1, 1]} : vector<2x24xf32> to vector<2x8xf32>
    %279 = arith.mulf %278, %240 : vector<2x8xf32>
    %280 = vector.extract_strided_slice %270 {offsets = [0, 0], sizes = [2, 8], strides = [1, 1]} : vector<2x24xf32> to vector<2x8xf32>
    %281 = vector.extract_strided_slice %256 {offsets = [0, 24], sizes = [2, 8], strides = [1, 1]} : vector<2x32xf32> to vector<2x8xf32>
    %282 = math.tanh %281 : vector<2x8xf32>
    %283 = arith.mulf %280, %282 : vector<2x8xf32>
    %284 = arith.addf %279, %283 : vector<2x8xf32>
    %285 = vector.extract_strided_slice %263 {offsets = [0, 16], sizes = [2, 8], strides = [1, 1]} : vector<2x24xf32> to vector<2x8xf32>
    %286 = math.tanh %277 : vector<2x8xf32>
    %287 = arith.mulf %285, %286 : vector<2x8xf32>
    %288 = vector.extract_strided_slice %270 {offsets = [0, 16], sizes = [2, 8], strides = [1, 1]} : vector<2x24xf32> to vector<2x8xf32>
    %289 = math.tanh %284 : vector<2x8xf32>
    %290 = arith.mulf %288, %289 : vector<2x8xf32>
    %291 = tpu.concatenate %287, %290 in 1 : vector<2x8xf32>, vector<2x8xf32> -> vector<2x16xf32>
    %cst_52 = arith.constant dense<0.000000e+00> : vector<2x64xf32>
    %292 = tpu.matmul %291, %4, %cst_52 {dimension_numbers = #tpu.dot_dimension_numbers<[1], [0], [0], [1], [0, 0, 1, 1], [], []>} : vector<2x16xf32>, vector<16x64xf32>, vector<2x64xf32> -> vector<2x64xf32>
    %293 = vector.extract_strided_slice %22 {offsets = [0, 6, 0], sizes = [2, 1, 32], strides = [1, 1, 1]} : vector<2x8x64xf32> to vector<2x1x32xf32>
    %294 = vector.shape_cast %293 : vector<2x1x32xf32> to vector<2x32xf32>
    %295 = vector.extract_strided_slice %292 {offsets = [0, 0], sizes = [2, 32], strides = [1, 1]} : vector<2x64xf32> to vector<2x32xf32>
    %296 = arith.addf %294, %295 : vector<2x32xf32>
    %297 = vector.extract_strided_slice %22 {offsets = [0, 1, 32], sizes = [2, 1, 32], strides = [1, 1, 1]} : vector<2x8x64xf32> to vector<2x1x32xf32>
    %298 = vector.shape_cast %297 : vector<2x1x32xf32> to vector<2x32xf32>
    %299 = vector.extract_strided_slice %292 {offsets = [0, 32], sizes = [2, 32], strides = [1, 1]} : vector<2x64xf32> to vector<2x32xf32>
    %300 = arith.addf %298, %299 : vector<2x32xf32>
    %301 = vector.extract_strided_slice %296 {offsets = [0, 0], sizes = [2, 24], strides = [1, 1]} : vector<2x32xf32> to vector<2x24xf32>
    %cst_53 = arith.constant 0.000000e+00 : f32
    %302 = vector.broadcast %cst_53 : f32 to vector<2x24xf32>
    %303 = arith.subf %302, %301 : vector<2x24xf32>
    %304 = math.exp %303 : vector<2x24xf32>
    %cst_54 = arith.constant 1.000000e+00 : f32
    %305 = vector.broadcast %cst_54 : f32 to vector<2x24xf32>
    %306 = arith.addf %305, %304 : vector<2x24xf32>
    %307 = tpu.reciprocal %306 {approx = true} : vector<2x24xf32> -> vector<2x24xf32>
    %308 = vector.extract_strided_slice %300 {offsets = [0, 0], sizes = [2, 24], strides = [1, 1]} : vector<2x32xf32> to vector<2x24xf32>
    %cst_55 = arith.constant 0.000000e+00 : f32
    %309 = vector.broadcast %cst_55 : f32 to vector<2x24xf32>
    %310 = arith.subf %309, %308 : vector<2x24xf32>
    %311 = math.exp %310 : vector<2x24xf32>
    %cst_56 = arith.constant 1.000000e+00 : f32
    %312 = vector.broadcast %cst_56 : f32 to vector<2x24xf32>
    %313 = arith.addf %312, %311 : vector<2x24xf32>
    %314 = tpu.reciprocal %313 {approx = true} : vector<2x24xf32> -> vector<2x24xf32>
    %315 = vector.extract_strided_slice %307 {offsets = [0, 8], sizes = [2, 8], strides = [1, 1]} : vector<2x24xf32> to vector<2x8xf32>
    %316 = arith.mulf %315, %277 : vector<2x8xf32>
    %317 = vector.extract_strided_slice %307 {offsets = [0, 0], sizes = [2, 8], strides = [1, 1]} : vector<2x24xf32> to vector<2x8xf32>
    %318 = vector.extract_strided_slice %296 {offsets = [0, 24], sizes = [2, 8], strides = [1, 1]} : vector<2x32xf32> to vector<2x8xf32>
    %319 = math.tanh %318 : vector<2x8xf32>
    %320 = arith.mulf %317, %319 : vector<2x8xf32>
    %321 = arith.addf %316, %320 : vector<2x8xf32>
    %322 = vector.extract_strided_slice %314 {offsets = [0, 8], sizes = [2, 8], strides = [1, 1]} : vector<2x24xf32> to vector<2x8xf32>
    %323 = arith.mulf %322, %284 : vector<2x8xf32>
    %324 = vector.extract_strided_slice %314 {offsets = [0, 0], sizes = [2, 8], strides = [1, 1]} : vector<2x24xf32> to vector<2x8xf32>
    %325 = vector.extract_strided_slice %300 {offsets = [0, 24], sizes = [2, 8], strides = [1, 1]} : vector<2x32xf32> to vector<2x8xf32>
    %326 = math.tanh %325 : vector<2x8xf32>
    %327 = arith.mulf %324, %326 : vector<2x8xf32>
    %328 = arith.addf %323, %327 : vector<2x8xf32>
    %329 = vector.extract_strided_slice %307 {offsets = [0, 16], sizes = [2, 8], strides = [1, 1]} : vector<2x24xf32> to vector<2x8xf32>
    %330 = math.tanh %321 : vector<2x8xf32>
    %331 = arith.mulf %329, %330 : vector<2x8xf32>
    %332 = vector.extract_strided_slice %314 {offsets = [0, 16], sizes = [2, 8], strides = [1, 1]} : vector<2x24xf32> to vector<2x8xf32>
    %333 = math.tanh %328 : vector<2x8xf32>
    %334 = arith.mulf %332, %333 : vector<2x8xf32>
    %335 = tpu.concatenate %331, %334 in 1 : vector<2x8xf32>, vector<2x8xf32> -> vector<2x16xf32>
    %cst_57 = arith.constant dense<0.000000e+00> : vector<2x64xf32>
    %336 = tpu.matmul %335, %4, %cst_57 {dimension_numbers = #tpu.dot_dimension_numbers<[1], [0], [0], [1], [0, 0, 1, 1], [], []>} : vector<2x16xf32>, vector<16x64xf32>, vector<2x64xf32> -> vector<2x64xf32>
    %337 = vector.extract_strided_slice %22 {offsets = [0, 7, 0], sizes = [2, 1, 32], strides = [1, 1, 1]} : vector<2x8x64xf32> to vector<2x1x32xf32>
    %338 = vector.shape_cast %337 : vector<2x1x32xf32> to vector<2x32xf32>
    %339 = vector.extract_strided_slice %336 {offsets = [0, 0], sizes = [2, 32], strides = [1, 1]} : vector<2x64xf32> to vector<2x32xf32>
    %340 = arith.addf %338, %339 : vector<2x32xf32>
    %341 = vector.extract_strided_slice %22 {offsets = [0, 0, 32], sizes = [2, 1, 32], strides = [1, 1, 1]} : vector<2x8x64xf32> to vector<2x1x32xf32>
    %342 = vector.shape_cast %341 : vector<2x1x32xf32> to vector<2x32xf32>
    %343 = vector.extract_strided_slice %336 {offsets = [0, 32], sizes = [2, 32], strides = [1, 1]} : vector<2x64xf32> to vector<2x32xf32>
    %344 = arith.addf %342, %343 : vector<2x32xf32>
    %345 = vector.extract_strided_slice %340 {offsets = [0, 0], sizes = [2, 24], strides = [1, 1]} : vector<2x32xf32> to vector<2x24xf32>
    %cst_58 = arith.constant 0.000000e+00 : f32
    %346 = vector.broadcast %cst_58 : f32 to vector<2x24xf32>
    %347 = arith.subf %346, %345 : vector<2x24xf32>
    %348 = math.exp %347 : vector<2x24xf32>
    %cst_59 = arith.constant 1.000000e+00 : f32
    %349 = vector.broadcast %cst_59 : f32 to vector<2x24xf32>
    %350 = arith.addf %349, %348 : vector<2x24xf32>
    %351 = tpu.reciprocal %350 {approx = true} : vector<2x24xf32> -> vector<2x24xf32>
    %352 = vector.extract_strided_slice %344 {offsets = [0, 0], sizes = [2, 24], strides = [1, 1]} : vector<2x32xf32> to vector<2x24xf32>
    %cst_60 = arith.constant 0.000000e+00 : f32
    %353 = vector.broadcast %cst_60 : f32 to vector<2x24xf32>
    %354 = arith.subf %353, %352 : vector<2x24xf32>
    %355 = math.exp %354 : vector<2x24xf32>
    %cst_61 = arith.constant 1.000000e+00 : f32
    %356 = vector.broadcast %cst_61 : f32 to vector<2x24xf32>
    %357 = arith.addf %356, %355 : vector<2x24xf32>
    %358 = tpu.reciprocal %357 {approx = true} : vector<2x24xf32> -> vector<2x24xf32>
    %359 = vector.extract_strided_slice %351 {offsets = [0, 8], sizes = [2, 8], strides = [1, 1]} : vector<2x24xf32> to vector<2x8xf32>
    %360 = arith.mulf %359, %321 : vector<2x8xf32>
    %361 = vector.extract_strided_slice %351 {offsets = [0, 0], sizes = [2, 8], strides = [1, 1]} : vector<2x24xf32> to vector<2x8xf32>
    %362 = vector.extract_strided_slice %340 {offsets = [0, 24], sizes = [2, 8], strides = [1, 1]} : vector<2x32xf32> to vector<2x8xf32>
    %363 = math.tanh %362 : vector<2x8xf32>
    %364 = arith.mulf %361, %363 : vector<2x8xf32>
    %365 = arith.addf %360, %364 : vector<2x8xf32>
    %366 = vector.extract_strided_slice %358 {offsets = [0, 8], sizes = [2, 8], strides = [1, 1]} : vector<2x24xf32> to vector<2x8xf32>
    %367 = arith.mulf %366, %328 : vector<2x8xf32>
    %368 = vector.extract_strided_slice %358 {offsets = [0, 0], sizes = [2, 8], strides = [1, 1]} : vector<2x24xf32> to vector<2x8xf32>
    %369 = vector.extract_strided_slice %344 {offsets = [0, 24], sizes = [2, 8], strides = [1, 1]} : vector<2x32xf32> to vector<2x8xf32>
    %370 = math.tanh %369 : vector<2x8xf32>
    %371 = arith.mulf %368, %370 : vector<2x8xf32>
    %372 = arith.addf %367, %371 : vector<2x8xf32>
    %373 = vector.extract_strided_slice %351 {offsets = [0, 16], sizes = [2, 8], strides = [1, 1]} : vector<2x24xf32> to vector<2x8xf32>
    %374 = math.tanh %365 : vector<2x8xf32>
    %375 = arith.mulf %373, %374 : vector<2x8xf32>
    %376 = vector.extract_strided_slice %358 {offsets = [0, 16], sizes = [2, 8], strides = [1, 1]} : vector<2x24xf32> to vector<2x8xf32>
    %377 = math.tanh %372 : vector<2x8xf32>
    %378 = arith.mulf %376, %377 : vector<2x8xf32>
    %379 = vector.shape_cast %67 : vector<2x8xf32> to vector<2x1x8xf32>
    %380 = vector.shape_cast %111 : vector<2x8xf32> to vector<2x1x8xf32>
    %381 = vector.shape_cast %155 : vector<2x8xf32> to vector<2x1x8xf32>
    %382 = vector.shape_cast %199 : vector<2x8xf32> to vector<2x1x8xf32>
    %383 = vector.shape_cast %243 : vector<2x8xf32> to vector<2x1x8xf32>
    %384 = vector.shape_cast %287 : vector<2x8xf32> to vector<2x1x8xf32>
    %385 = vector.shape_cast %331 : vector<2x8xf32> to vector<2x1x8xf32>
    %386 = vector.shape_cast %375 : vector<2x8xf32> to vector<2x1x8xf32>
    %387 = tpu.concatenate %379, %380, %381, %382, %383, %384, %385, %386 in 1 : vector<2x1x8xf32>, vector<2x1x8xf32>, vector<2x1x8xf32>, vector<2x1x8xf32>, vector<2x1x8xf32>, vector<2x1x8xf32>, vector<2x1x8xf32>, vector<2x1x8xf32> -> vector<2x8x8xf32>
    %388 = vector.shape_cast %378 : vector<2x8xf32> to vector<2x1x8xf32>
    %389 = vector.shape_cast %334 : vector<2x8xf32> to vector<2x1x8xf32>
    %390 = vector.shape_cast %290 : vector<2x8xf32> to vector<2x1x8xf32>
    %391 = vector.shape_cast %246 : vector<2x8xf32> to vector<2x1x8xf32>
    %392 = vector.shape_cast %202 : vector<2x8xf32> to vector<2x1x8xf32>
    %393 = vector.shape_cast %158 : vector<2x8xf32> to vector<2x1x8xf32>
    %394 = vector.shape_cast %114 : vector<2x8xf32> to vector<2x1x8xf32>
    %395 = vector.shape_cast %70 : vector<2x8xf32> to vector<2x1x8xf32>
    %396 = tpu.concatenate %388, %389, %390, %391, %392, %393, %394, %395 in 1 : vector<2x1x8xf32>, vector<2x1x8xf32>, vector<2x1x8xf32>, vector<2x1x8xf32>, vector<2x1x8xf32>, vector<2x1x8xf32>, vector<2x1x8xf32>, vector<2x1x8xf32> -> vector<2x8x8xf32>
    %397 = tpu.concatenate %387, %396 in 2 : vector<2x8x8xf32>, vector<2x8x8xf32> -> vector<2x8x16xf32>
    %398 = vector.shape_cast %397 : vector<2x8x16xf32> to vector<16x16xf32>
    %cst_62 = arith.constant dense<0.000000e+00> : vector<16x4xf32>
    %399 = tpu.matmul %398, %6, %cst_62 {dimension_numbers = #tpu.dot_dimension_numbers<[1], [0], [0], [1], [0, 0, 1, 1], [], []>} : vector<16x16xf32>, vector<16x4xf32>, vector<16x4xf32> -> vector<16x4xf32>
    %400 = vector.broadcast %7 : vector<1x4xf32> to vector<16x4xf32>
    %401 = arith.addf %399, %400 : vector<16x4xf32>
    %402 = vector.shape_cast %401 : vector<16x4xf32> to vector<2x8x4xf32>
    %c0_63 = arith.constant 0 : index
    %c0_64 = arith.constant 0 : index
    %c0_65 = arith.constant 0 : index
    %403 = vector.load %arg8[%c0_63, %c0_64, %c0_65] : memref<2x8x4xf32, #tpu.memory_space<vmem>>, vector<2x8x4xf32>
    tpu.vector_store %arg8[%c0_63, %c0_64, %c0_65], %402 {strides = array<i32>} : memref<2x8x4xf32, #tpu.memory_space<vmem>>, vector<2x8x4xf32>,
    return
  }
}

</mosaic_0001>

<bundles_post_ra>
// kernel: absa_head_pallas.1
= control target key start
LH: loop header
LB: loop body
LE: loop exit
PB: predicated region body
PF: predicated region fallthrough
CT: control target
= control target key end

     0   :  { %v2606_v0 = vmov 0.0|0.0   ;;  %vm2607_vm0 = vmmov 0   ;;  %v2608_v8 = vmov 0.0   ;;  %v2609_v12 = vmov 0   ;;  %s2612_s18 = smov 8   ;;  %s2614_s19 = smov 88   ;;  %s3230_s0 = inlined_call_operand.vmem [shape: f32[2,96,14], index: 0, kind: input, shape index: {}]   ;;  %s3231_s2 = inlined_call_operand.vmem [shape: f32[8,1], index: 2, kind: input, shape index: {}]   ;;  %s3232_s3 = inlined_call_operand.vmem [shape: f32[14,64], index: 3, kind: input, shape index: {}]   ;;  %s3233_s1 = inlined_call_operand.vmem [shape: f32[8,96], index: 1, kind: input, shape index: {}]   ;;  %s3234_s4 = inlined_call_operand.vmem [shape: f32[16,64], index: 4, kind: input, shape index: {}]   ;;  %s3235_s5 = inlined_call_operand.vmem [shape: f32[1,64], index: 5, kind: input, shape index: {}]   ;;  %s3236_s6 = inlined_call_operand.vmem [shape: f32[16,4], index: 6, kind: input, shape index: {}]   ;;  %s3237_s7 = inlined_call_operand.vmem [shape: f32[1,4], index: 7, kind: input, shape index: {}]   ;;  %s3238_s8 = inlined_call_operand.vmem [shape: f32[2,8,4], index: 8, kind: output, shape index: {}]  }
   0x1   :  { %2270 = vmatprep.subr.bf16.mxu0 %v2606_v0  ;;  %2288 = vmatprep.subr.bf16.mxu1 %v2606_v0  ;;  %v29_v1 = vld [vmem:[%s3230_s0] sm:$0xff]  ;;  %v30_v2 = vld [vmem:[%s3230_s0 + $0x8] sm:$0xff]  ;;  %v31_v6 = vld [vmem:[%s3230_s0 + $0x10] sm:$0xff]  ;;  %vm225_vm1 = vcmask 1045504   ;;  %vm2610_vm2 = vmmov 1   ;;  %vm68_vm4 = vcmask 785408  }
   0x2   :  { %v41_v3 = vld [vmem:[%s3230_s0 + $0x60] sm:$0xff]  ;;  %v2271_v4 = vpack.c.bf16 %v30_v2, %v29_v1  ;;  %v42_v5 = vld [vmem:[%s3230_s0 + $0x68] sm:$0xff]  ;;  %v32_v7 = vld [vmem:[%s3230_s0 + $0x18] sm:$0xff]  ;;  %2170 = vmatprep.mubr.msk.f32.mxu0 %vm2607_vm0, %v2608_v8  ;;  %2197 = vmatprep.mubr.msk.f32.mxu1 %vm2607_vm0, %v2608_v8  ;;  %vm218_vm5 = vcmask 113664   ;;  %vm483_vm6 = vcmask 1041409   ;;  %vm496_vm7 = vcmask 64512  }
   0x3   :  { %v2289_v9 = vpack.c.bf16 %v42_v5, %v41_v3  ;;  %v43_v10 = vld [vmem:[%s3230_s0 + $0x70] sm:$0xff]  ;;  %v44_v11 = vld [vmem:[%s3230_s0 + $0x78] sm:$0xff]  ;;  %2349 = vset.pattern.permute.xlu0 %v2609_v12  ;;  %v2274_v13 = vpack.c.bf16 %v32_v7, %v31_v6  ;;  %v33_v15 = vld [vmem:[%s3230_s0 + $0x20] sm:$0xff]  ;;  %vm304_vm8 = vcmask 130048   ;;  %vm690_vm9 = vcmask 1042434  }
   0x4   :  { %2272 = vmatpush3.bf16.msra.mxu0 %v2271_v4  ;;  %v2292_v14 = vpack.c.bf16 %v44_v11, %v43_v10  ;;  %v34_v16 = vld [vmem:[%s3230_s0 + $0x28] sm:$0xff]  ;;  %v45_v17 = vld [vmem:[%s3230_s0 + $0x80] sm:$0xff]  ;;  %v35_v21 = vld [vmem:[%s3230_s0 + $0x30] sm:$0xff]  ;;  %vm1926_vm10 = vcmask 1040384   ;;  %vm1929_vm11 = vcmask 1041408   ;;  %vm898_vm12 = vcmask 1043459  }
   0x5   :  { %2290 = vmatpush3.bf16.msra.mxu1 %v2289_v9  ;;  %2273 = vmatprep.subr.bf16.mxu0 %v2606_v0  ;;  %v46_v18 = vld [vmem:[%s3230_s0 + $0x88] sm:$0xff]  ;;  %v2277_v19 = vpack.c.bf16 %v34_v16, %v33_v15  ;;  %v36_v22 = vld [vmem:[%s3230_s0 + $0x38] sm:$0xff]  ;;  %v54_v23 = vld [vmem:[%s3231_s2] sm:$0xff]  ;;  %s2613_s2 = smov 112   ;;  %vm1932_vm13 = vcmask 1042432   ;;  %vm1104_vm14 = vcmask 1044484  }
   0x6   :  { %2291 = vmatprep.subr.bf16.mxu1 %v2606_v0  ;;  %v2295_v20 = vpack.c.bf16 %v46_v18, %v45_v17  ;;  %v47_v24 = vld [vmem:[%s3230_s0 + $0x90] sm:$0xff]  ;;  %v48_v25 = vld [vmem:[%s3230_s0 + $0x98] sm:$0xff]  ;;  %65 = vperm.xlu0 %2349, %v54_v23   ;;  %v2280_v26 = vpack.c.bf16 %v36_v22, %v35_v21  ;;  %v37_v28 = vld [vmem:[%s3230_s0 + $0x40] sm:$0xff]  ;;  %vm1935_vm15 = vcmask 1043456  }
   0x7   :  { %v2298_v27 = vpack.c.bf16 %v48_v25, %v47_v24  ;;  %v38_v29 = vld [vmem:[%s3230_s0 + $0x48] sm:$0xff]  ;;  %v49_v30 = vld [vmem:[%s3230_s0 + $0xa0] sm:$0xff]  ;;  %v39_v34 = vld [vmem:[%s3230_s0 + $0x50] sm:$0xff] }
   0x8   :  { %2275 = vmatpush3.bf16.msra.mxu0 %v2274_v13  ;;  %v50_v31 = vld [vmem:[%s3230_s0 + $0xa8] sm:$0xff]  ;;  %v2283_v32 = vpack.c.bf16 %v38_v29, %v37_v28  ;;  %v40_v35 = vld [vmem:[%s3230_s0 + $0x58] sm:$0xff]  ;;  %v51_v36 = vld [vmem:[%s3230_s0 + $0xb0] sm:$0xff] }
   0x9   :  { %2293 = vmatpush3.bf16.msra.mxu1 %v2292_v14  ;;  %2276 = vmatprep.subr.bf16.mxu0 %v2606_v0  ;;  %v2301_v33 = vpack.c.bf16 %v50_v31, %v49_v30  ;;  %v52_v37 = vld [vmem:[%s3230_s0 + $0xb8] sm:$0xff]  ;;  %v55_v38 = vld [vmem:[%s3232_s3] sm:$0xff]  ;;  %v56_v39 = vld [vmem:[%s3232_s3 + $0x8] sm:$0x3f]  ;;  %v2286_v40 = vpack.c.bf16 %v40_v35, %v39_v34 }
   0xa   :  { %2294 = vmatprep.subr.bf16.mxu1 %v2606_v0  ;;  %v2304_v41 = vpack.c.bf16 %v52_v37, %v51_v36  ;;  %v2306_v42 = vpack.c.bf16 %v56_v39, %v55_v38  ;;  %vm2307_vm3 = vmpackc.low %vm225_vm1, %vm2610_vm2  ;;  %v53_v43 = vld [vmem:[%s3233_s1] sm:$0xff]  ;;  %v58_v45 = vld [vmem:[%s3234_s4 + $0x8] sm:$0xff]  ;;  %vm1309_vm2 = vcmask 1045509  }
   0xb   :  { %v57_v44 = vld [vmem:[%s3234_s4] sm:$0xff] }
   0xc   :  { %2278 = vmatpush3.bf16.msra.mxu0 %v2277_v19  ;;  %v2771_v46 = vpack.c.bf16 %v58_v45, %v57_v44  ;;  %v2074_v56 = vld [vmem:[%s3235_s5] ss:$0 sm:$0xff]  ;;  %s2611_s5 = smov 104  }
   0xd   :  { %2296 = vmatpush3.bf16.msra.mxu1 %v2295_v20  ;;  %2279 = vmatprep.subr.bf16.mxu0 %v2606_v0 }
   0xe   :  { %2297 = vmatprep.subr.bf16.mxu1 %v2606_v0 }
  0x10   :  { %2281 = vmatpush3.bf16.msra.mxu0 %v2280_v26 }
  0x11   :  { %2299 = vmatpush3.bf16.msra.mxu1 %v2298_v27  ;;  %2282 = vmatprep.subr.bf16.mxu0 %v2606_v0 }
  0x12   :  { %2300 = vmatprep.subr.bf16.mxu1 %v2606_v0 }
  0x14   :  { %2284 = vmatpush3.bf16.msra.mxu0 %v2283_v32 }
  0x15   :  { %2302 = vmatpush3.bf16.msra.mxu1 %v2301_v33  ;;  %2285 = vmatprep.subr.bf16.mxu0 %v2606_v0 }
  0x16   :  { %2303 = vmatprep.subr.bf16.mxu1 %v2606_v0 }
  0x18   :  { %2287 = vmatpush3.bf16.msra.mxu0 %v2286_v40 }
  0x19   :  { %2305 = vmatpush3.bf16.msra.mxu1 %v2304_v41  ;;  %2308 = vmatprep.subr.msk.bf16.mxu0 %vm2307_vm3, %v2306_v42 }
  0x1a   :  { %2312 = vmatprep.subr.bf16.mxu1 %v2606_v0 }
  0x1b   :  { %2171 = vmatmul.mubr.msk.f32.vlgmr.msra.gmra.mrb[0].mxu0 %vm68_vm4, %v53_v43 }
  0x1c   :  { %2198 = vmatmul.mubr.msk.f32.vlgmr.msra.gmra.mrb[0].mxu1 %vm68_vm4, %v53_v43  ;;  %2311 = vmatpush3.bf16.msk.msra.mxu0 %vm2307_vm3, %v2306_v42  ;;  %vm1517_vm3 = vcmask 1046534   ;;  %vm1724_vm4 = vcmask 1047559  }
  0x1d   :  { %2211 = vmatprep.mubr.msk.f32.mxu1 %vm2607_vm0, %v2608_v8  ;;  %2315 = vmatprep.subr.bf16.mxu0 %v2606_v0 }
  0x1e   :  { %2314 = vmatpush3.bf16.msra.mxu1 %v2771_v46 }
  0x1f   :  { %2318 = vmatprep.subr.bf16.mxu1 %v2606_v0 }
  0x21   :  { %2212 = vmatmul.mubr.f32.vlgmr.msra.gmra.mrb[2].mxu1 %v2608_v8 }
  0x22   :  { %2320 = vmatpush3.bf16.msra.mxu1 %v2771_v46  ;;  %2225 = vmatprep.mubr.msk.f32.mxu1 %vm2607_vm0, %v2608_v8 }
  0x23   :  { %2324 = vmatprep.subr.bf16.mxu1 %v2606_v0 }
  0x85   :  { %v66_v47 = vpop.permute.xlu0 %65 }
  0xee   :  { %v138_v48 = vpop.f32.mrb[0].mxu0 }
  0xef   :  { %v139_v49 = vadd.f32 %v138_v48, %v66_v47  ;;  %v208_v50 = vpop.f32.mrb[0].mxu1  ;;  %v2172_v51 = vpop.f32.mrb[1].mxu0 }
  0xf0   :  { %v209_v52 = vadd.f32 %v208_v50, %v66_v47  ;;  %v2199_v53 = vpop.f32.mrb[1].mxu1 }
  0xf1   :  { %2204 = vmatprep.mubr.msk.f32.mxu0 %vm218_vm5, %v139_v49 }
  0xf2   :  { %2205 = vmatmul.mubr.msk.f32.vlgmr.msra.gmra.mrb[2].mxu0 %vm218_vm5, %v209_v52  ;;  %vm1943_vm5 = vcmask 1046528  }
  0xf3   :  { %2317 = vmatpush3.bf16.msra.mxu0 %v2771_v46  ;;  %2218 = vmatprep.mubr.msk.f32.mxu0 %vm2607_vm0, %v2608_v8 }
  0xf4   :  { %2321 = vmatprep.subr.bf16.mxu0 %v2606_v0  ;;  %v374_v54 = vpop.f32.mrb[2].mxu1 }
  0xf5   :  { %v2213_v55 = vpop.f32.mrb[3].mxu1  ;;  %v379_v57 = vrot.slane %v374_v54, 1  ;;  %v384_v63 = vrot.slane %v374_v54, 2 }
 0x1c5   :  { %v2206_v58 = vpop.f32.mrb[2].mxu0 }
 0x1c6   :  { %v2787_v59 = vadd.f32 %v2206_v58, %v2074_v56  ;;  %v295_v60 = vpop.f32.mrb[3].mxu0 }
 0x1c7   :  { %v2789_v61 = vadd.f32 %v2074_v56, %v295_v60 }
 0x1c8   :  { %v383_v62 = vadd.f32 %v379_v57, %v2787_v59  ;;  %v387_v3 = vadd.f32 %v384_v63, %v2787_v59 }
 0x1c9   :  { %v386_v1 = vadd.f32 %v379_v57, %v2789_v61  ;;  %v382_v2 = vadd.f32 %v374_v54, %v2789_v61 }
 0x1ca   :  { %2350 = vtanh.f32 %v383_v62  ;;  %v389_v9 = vsub.f32 0.0, %v383_v62  ;;  %v399_v13 = vsub.f32 0.0, %v387_v3 }
 0x1cb   :  { %2352 = vtanh.f32 %v386_v1  ;;  %v398_v10 = vsub.f32 0.0, %v386_v1  ;;  %v388_v12 = vsub.f32 0.0, %v382_v2 }
 0x1cc   :  { %2354 = vtanh.f32 %v382_v2  ;;  %v392_v11 = vmul.f32 1.442695, %v389_v9  ;;  %v402_v16 = vmul.f32 1.442695, %v399_v13 }
 0x1cd   :  { %2356 = vtanh.f32 %v387_v3  ;;  %v400_v14 = vmul.f32 1.442695, %v398_v10  ;;  %v390_v15 = vmul.f32 1.442695, %v388_v12 }
 0x1ce   :  { %2358 = vpow2.f32 %v392_v11 }
 0x1cf   :  { %2360 = vpow2.f32 %v400_v14 }
 0x1d0   :  { %2362 = vpow2.f32 %v390_v15 }
 0x1d1   :  { %2364 = vpow2.f32 %v402_v16 }
 0x1d4   :  { %v2351_v4 = vpop.eup %2350 }
 0x1d5   :  { %416 = vrot.lane.b32.xlu0 %v2351_v4, %s2611_s5  ;;  %v2353_v5 = vpop.eup %2352 }
 0x1d6   :  { %438 = vrot.lane.b32.xlu1 %v2353_v5, %s2611_s5  ;;  %v2355_v6 = vpop.eup %2354 }
 0x1d7   :  { %v2357_v7 = vpop.eup %2356 }
 0x1d8   :  { %v2359_v17 = vpop.eup %2358 }
 0x1d9   :  { %414 = vrot.lane.b32.xlu0 %v2355_v6, %s2611_s5  ;;  %v2361_v18 = vpop.eup %2360  ;;  %v395_v19 = vadd.f32 1.0, %v2359_v17 }
 0x1da   :  { %440 = vrot.lane.b32.xlu1 %v2357_v7, %s2611_s5  ;;  %v2363_v20 = vpop.eup %2362  ;;  %v404_v21 = vadd.f32 1.0, %v2361_v18 }
 0x1db   :  { %v2365_v22 = vpop.eup %2364  ;;  %2366 = vrcp.f32 %v395_v19  ;;  %v394_v23 = vadd.f32 1.0, %v2363_v20 }
 0x1dc   :  { %v405_v24 = vadd.f32 1.0, %v2365_v22  ;;  %2368 = vrcp.f32 %v404_v21 }
 0x1dd   :  { %2370 = vrcp.f32 %v394_v23 }
 0x1de   :  { %2372 = vrcp.f32 %v405_v24 }
 0x1e5   :  { %v2367_v25 = vpop.eup %2366 }
 0x1e6   :  { %v2369_v28 = vpop.eup %2368  ;;  %v409_v37 = vmul.f32 0.0, %v2367_v25 }
 0x1e7   :  { %v2371_v31 = vpop.eup %2370  ;;  %v432_v40 = vmul.f32 0.0, %v2369_v28 }
 0x1e8   :  { %v2373_v34 = vpop.eup %2372  ;;  %v408_v44 = vmul.f32 0.0, %v2371_v31 }
 0x1e9   :  { %v433_v43 = vmul.f32 0.0, %v2373_v34 }
 0x247   :  { %v417_v26 = vpop.permute.xlu0 %416 }
 0x248   :  { %v421_v27 = vmul.f32 %v2367_v25, %v417_v26  ;;  %v439_v29 = vpop.permute.xlu1 %438 }
 0x249   :  { %v444_v30 = vmul.f32 %v2369_v28, %v439_v29 }
 0x24a   :  { %426 = vrot.lane.b32.xlu1 %v421_v27, %s2612_s18 }
 0x24b   :  { %v415_v32 = vpop.permute.xlu0 %414  ;;  %448 = vrot.lane.b32.xlu0 %v444_v30, %s2612_s18 }
 0x24c   :  { %v420_v33 = vmul.f32 %v2371_v31, %v415_v32  ;;  %v441_v35 = vpop.permute.xlu1 %440 }
 0x24d   :  { %v445_v36 = vmul.f32 %v2373_v34, %v441_v35 }
 0x24f   :  { %450 = vrot.lane.b32.xlu1 %v445_v36, %s2612_s18  ;;  %424 = vrot.lane.b32.xlu0 %v420_v33, %s2612_s18 }
 0x2bc   :  { %v427_v38 = vpop.permute.xlu1 %426 }
 0x2bd   :  { %v2803_v39 = vadd.f32 %v427_v38, %v409_v37  ;;  %v449_v41 = vpop.permute.xlu0 %448 }
 0x2be   :  { %v2806_v42 = vadd.f32 %v449_v41, %v432_v40 }
 0x2bf   :  { %2374 = vtanh.f32 %v2803_v39 }
 0x2c0   :  { %2376 = vtanh.f32 %v2806_v42 }
 0x2c1   :  { %v451_v45 = vpop.permute.xlu1 %450  ;;  %v425_v47 = vpop.permute.xlu0 %424 }
 0x2c2   :  { %v2809_v48 = vadd.f32 %v451_v45, %v433_v43  ;;  %v2811_v49 = vadd.f32 %v425_v47, %v408_v44 }
 0x2c4   :  { %2378 = vtanh.f32 %v2809_v48 }
 0x2c5   :  { %2380 = vtanh.f32 %v2811_v49 }
 0x2c9   :  { %v2375_v50 = vpop.eup %2374 }
 0x2ca   :  { %462 = vrot.lane.b32.xlu1 %v2375_v50, %s2612_s18  ;;  %v2377_v51 = vpop.eup %2376 }
 0x2cb   :  { %472 = vrot.lane.b32.xlu0 %v2377_v51, %s2612_s18 }
 0x2ce   :  { %v2379_v52 = vpop.eup %2378 }
 0x2cf   :  { %v2381_v53 = vpop.eup %2380  ;;  %474 = vrot.lane.b32.xlu1 %v2379_v52, %s2612_s18 }
 0x2d0   :  { %460 = vrot.lane.b32.xlu0 %v2381_v53, %s2612_s18 }
 0x33c   :  { %v463_v54 = vpop.permute.xlu1 %462 }
 0x33d   :  { %v473_v55 = vpop.permute.xlu0 %472  ;;  %v2819_v56 = vmul.f32 %v2367_v25, %v463_v54 }
 0x33e   :  { %v2821_v57 = vmul.f32 %v2369_v28, %v473_v55 }
 0x33f   :  { %v482_v63 = vrot.slane %v2819_v56, 7 }
 0x340   :  { %v490_v2 = vrot.slane %v2821_v57, 7 }
 0x341   :  { %v475_v58 = vpop.permute.xlu1 %474 }
 0x342   :  { %v2823_v60 = vmul.f32 %v2373_v34, %v475_v58  ;;  %v461_v62 = vpop.permute.xlu0 %460  ;;  %v606_v58 = vrot.slane %v2803_v39, 7 }
 0x343   :  { %v2826_v1 = vmul.f32 %v2371_v31, %v461_v62 }
 0x344   :  { %v491_v3 = vrot.slane %v2823_v60, 6 }
 0x345   :  { %v484_v4 = vsel %vm483_vm6, %v482_v63, %v2826_v1 }
 0x346   :  { %485 = vrot.lane.b32.xlu1 %v484_v4, %s2613_s2  ;;  %v492_v5 = vsel %vm483_vm6, %v491_v3, %v490_v2  ;;  %v635_v2 = vrot.slane %v2806_v42, 1 }
 0x347   :  { %493 = vrot.lane.b32.xlu0 %v492_v5, %s2614_s19 }
 0x3b8   :  { %v486_v6 = vpop.permute.xlu1 %485 }
 0x3b9   :  { %v494_v7 = vpop.permute.xlu0 %493 }
 0x3ba   :  { %v497_v9 = vsel %vm496_vm7, %v486_v6, %v494_v7  ;;  %v636_v6 = vrot.slane %v2809_v48, 1  ;;  %v605_v7 = vrot.slane %v2811_v49, 7 }
 0x3bb   :  { %2219 = vmatmul.mubr.msk.f32.vlgmr.msra.gmra.mrb[4].mxu0 %vm304_vm8, %v497_v9 }
 0x3bc   :  { %2323 = vmatpush3.bf16.msra.mxu0 %v2771_v46  ;;  %2232 = vmatprep.mubr.msk.f32.mxu0 %vm2607_vm0, %v2608_v8 }
 0x3bd   :  { %2327 = vmatprep.subr.bf16.mxu0 %v2606_v0 }
 0x48e   :  { %v567_v10 = vpop.f32.mrb[4].mxu0 }
 0x48f   :  { %v576_v11 = vadd.f32 %v567_v10, %v2787_v59  ;;  %v577_v12 = vrot.slane %v567_v10, 2  ;;  %v2220_v13 = vpop.f32.mrb[5].mxu0  ;;  %v572_v14 = vrot.slane %v567_v10, 7  ;;  %v578_v15 = vrot.slane %v567_v10, 3 }
 0x491   :  { %v581_v16 = vadd.f32 %v577_v12, %v2789_v61  ;;  %2382 = vtanh.f32 %v576_v11  ;;  %v575_v17 = vadd.f32 %v572_v14, %v2789_v61  ;;  %v582_v18 = vadd.f32 %v578_v15, %v2787_v59 }
 0x492   :  { %v584_v23 = vsub.f32 0.0, %v576_v11 }
 0x493   :  { %2384 = vtanh.f32 %v581_v16  ;;  %v593_v25 = vsub.f32 0.0, %v581_v16  ;;  %v583_v26 = vsub.f32 0.0, %v575_v17  ;;  %v594_v27 = vsub.f32 0.0, %v582_v18 }
 0x494   :  { %2386 = vtanh.f32 %v575_v17  ;;  %v587_v24 = vmul.f32 1.442695, %v584_v23 }
 0x495   :  { %2388 = vtanh.f32 %v582_v18  ;;  %v595_v28 = vmul.f32 1.442695, %v593_v25  ;;  %v585_v29 = vmul.f32 1.442695, %v583_v26  ;;  %v597_v30 = vmul.f32 1.442695, %v594_v27 }
 0x496   :  { %2390 = vpow2.f32 %v587_v24 }
 0x497   :  { %2392 = vpow2.f32 %v595_v28 }
 0x498   :  { %2394 = vpow2.f32 %v585_v29 }
 0x499   :  { %2396 = vpow2.f32 %v597_v30 }
 0x49b   :  { %v2383_v19 = vpop.eup %2382 }
 0x49c   :  { %617 = vrot.lane.b32.xlu1 %v2383_v19, %s2611_s5 }
 0x49d   :  { %v2385_v20 = vpop.eup %2384 }
 0x49e   :  { %645 = vrot.lane.b32.xlu0 %v2385_v20, %s2611_s5  ;;  %v2387_v21 = vpop.eup %2386 }
 0x49f   :  { %v2389_v22 = vpop.eup %2388 }
 0x4a0   :  { %647 = vrot.lane.b32.xlu1 %v2389_v22, %s2611_s5  ;;  %v2391_v31 = vpop.eup %2390 }
 0x4a1   :  { %v590_v32 = vadd.f32 1.0, %v2391_v31  ;;  %v2393_v33 = vpop.eup %2392 }
 0x4a2   :  { %615 = vrot.lane.b32.xlu0 %v2387_v21, %s2611_s5  ;;  %v2395_v34 = vpop.eup %2394  ;;  %v599_v35 = vadd.f32 1.0, %v2393_v33 }
 0x4a3   :  { %2398 = vrcp.f32 %v590_v32  ;;  %v2397_v36 = vpop.eup %2396  ;;  %v589_v37 = vadd.f32 1.0, %v2395_v34 }
 0x4a4   :  { %v600_v38 = vadd.f32 1.0, %v2397_v36  ;;  %2400 = vrcp.f32 %v599_v35 }
 0x4a5   :  { %2402 = vrcp.f32 %v589_v37 }
 0x4a6   :  { %2404 = vrcp.f32 %v600_v38 }
 0x4ad   :  { %v2399_v40 = vpop.eup %2398 }
 0x4ae   :  { %v2401_v44 = vpop.eup %2400  ;;  %v610_v62 = vmul.f32 %v2399_v40, %v606_v58 }
 0x4af   :  { %v2403_v50 = vpop.eup %2402  ;;  %v639_v4 = vmul.f32 %v2401_v44, %v635_v2 }
 0x4b0   :  { %v2405_v51 = vpop.eup %2404  ;;  %v609_v39 = vmul.f32 %v2403_v50, %v605_v7 }
 0x4b1   :  { %v640_v10 = vmul.f32 %v2405_v51, %v636_v6 }
 0x50e   :  { %v618_v41 = vpop.permute.xlu1 %617 }
 0x50f   :  { %v622_v43 = vmul.f32 %v2399_v40, %v618_v41 }
 0x510   :  { %v646_v45 = vpop.permute.xlu0 %645 }
 0x511   :  { %627 = vrot.lane.b32.xlu1 %v622_v43, %s2612_s18  ;;  %v651_v47 = vmul.f32 %v2401_v44, %v646_v45 }
 0x512   :  { %v648_v52 = vpop.permute.xlu1 %647 }
 0x513   :  { %655 = vrot.lane.b32.xlu0 %v651_v47, %s2612_s18  ;;  %v652_v54 = vmul.f32 %v2405_v51, %v648_v52 }
 0x514   :  { %v616_v53 = vpop.permute.xlu0 %615 }
 0x515   :  { %v621_v55 = vmul.f32 %v2403_v50, %v616_v53  ;;  %657 = vrot.lane.b32.xlu1 %v652_v54, %s2612_s18 }
 0x517   :  { %625 = vrot.lane.b32.xlu0 %v621_v55, %s2612_s18 }
 0x583   :  { %v628_v63 = vpop.permute.xlu1 %627 }
 0x584   :  { %v2853_v3 = vadd.f32 %v628_v63, %v610_v62 }
 0x585   :  { %v656_v5 = vpop.permute.xlu0 %655 }
 0x586   :  { %2406 = vtanh.f32 %v2853_v3  ;;  %v2858_v9 = vadd.f32 %v656_v5, %v639_v4 }
 0x587   :  { %v658_v11 = vpop.permute.xlu1 %657 }
 0x588   :  { %2408 = vtanh.f32 %v2858_v9  ;;  %v2861_v13 = vadd.f32 %v658_v11, %v640_v10 }
 0x589   :  { %v626_v12 = vpop.permute.xlu0 %625 }
 0x58a   :  { %v2863_v42 = vadd.f32 %v626_v12, %v609_v39  ;;  %2410 = vtanh.f32 %v2861_v13 }
 0x58c   :  { %2412 = vtanh.f32 %v2863_v42 }
 0x590   :  { %v2407_v14 = vpop.eup %2406 }
 0x591   :  { %669 = vrot.lane.b32.xlu1 %v2407_v14, %s2612_s18 }
 0x592   :  { %v2409_v48 = vpop.eup %2408 }
 0x593   :  { %679 = vrot.lane.b32.xlu0 %v2409_v48, %s2612_s18 }
 0x594   :  { %v2411_v49 = vpop.eup %2410 }
 0x595   :  { %681 = vrot.lane.b32.xlu1 %v2411_v49, %s2612_s18 }
 0x596   :  { %v2413_v15 = vpop.eup %2412 }
 0x597   :  { %667 = vrot.lane.b32.xlu0 %v2413_v15, %s2612_s18 }
 0x603   :  { %v670_v16 = vpop.permute.xlu1 %669 }
 0x604   :  { %v2871_v18 = vmul.f32 %v2399_v40, %v670_v16 }
 0x605   :  { %v680_v17 = vpop.permute.xlu0 %679 }
 0x606   :  { %v2873_v19 = vmul.f32 %v2401_v44, %v680_v17  ;;  %v689_v23 = vrot.slane %v2871_v18, 7 }
 0x607   :  { %v682_v20 = vpop.permute.xlu1 %681 }
 0x608   :  { %v2875_v21 = vmul.f32 %v2405_v51, %v682_v20  ;;  %v697_v25 = vrot.slane %v2873_v19, 5 }
 0x609   :  { %v668_v22 = vpop.permute.xlu0 %667 }
 0x60a   :  { %v2878_v24 = vmul.f32 %v2403_v50, %v668_v22  ;;  %v698_v26 = vrot.slane %v2875_v21, 4 }
 0x60c   :  { %v691_v27 = vsel %vm690_vm9, %v689_v23, %v2878_v24  ;;  %v699_v28 = vsel %vm690_vm9, %v698_v26, %v697_v25 }
 0x60d   :  { %692 = vrot.lane.b32.xlu1 %v691_v27, %s2613_s2  ;;  %700 = vrot.lane.b32.xlu0 %v699_v28, %s2614_s19  ;;  %v814_v28 = vrot.slane %v2853_v3, 7 }
 0x67f   :  { %v693_v29 = vpop.permute.xlu1 %692  ;;  %v701_v30 = vpop.permute.xlu0 %700 }
 0x680   :  { %v703_v31 = vsel %vm496_vm7, %v693_v29, %v701_v30  ;;  %v843_v29 = vrot.slane %v2858_v9, 1 }
 0x681   :  { %v705_v32 = vrot.slane %v703_v31, 1 }
 0x683   :  { %2226 = vmatmul.mubr.msk.f32.vlgmr.msra.gmra.mrb[4].mxu1 %vm304_vm8, %v705_v32 }
 0x684   :  { %2326 = vmatpush3.bf16.msra.mxu1 %v2771_v46  ;;  %2239 = vmatprep.mubr.msk.f32.mxu1 %vm2607_vm0, %v2608_v8 }
 0x685   :  { %2330 = vmatprep.subr.bf16.mxu1 %v2606_v0 }
 0x756   :  { %v774_v33 = vpop.f32.mrb[4].mxu1 }
 0x757   :  { %v780_v34 = vrot.slane %v774_v33, 7  ;;  %v785_v35 = vrot.slane %v774_v33, 3  ;;  %v2227_v36 = vpop.f32.mrb[5].mxu1  ;;  %v779_v38 = vrot.slane %v774_v33, 6  ;;  %v786_v41 = vrot.slane %v774_v33, 4 }
 0x759   :  { %v784_v37 = vadd.f32 %v780_v34, %v2787_v59  ;;  %v789_v40 = vadd.f32 %v785_v35, %v2789_v61  ;;  %v783_v43 = vadd.f32 %v779_v38, %v2789_v61  ;;  %v790_v44 = vadd.f32 %v786_v41, %v2787_v59 }
 0x75a   :  { %v813_v35 = vrot.slane %v2863_v42, 7 }
 0x75b   :  { %2414 = vtanh.f32 %v784_v37  ;;  %v792_v52 = vsub.f32 0.0, %v784_v37  ;;  %v801_v53 = vsub.f32 0.0, %v789_v40  ;;  %v791_v55 = vsub.f32 0.0, %v783_v43 }
 0x75c   :  { %2416 = vtanh.f32 %v789_v40  ;;  %v802_v62 = vsub.f32 0.0, %v790_v44  ;;  %v844_v37 = vrot.slane %v2861_v13, 1 }
 0x75d   :  { %2418 = vtanh.f32 %v783_v43  ;;  %v795_v54 = vmul.f32 1.442695, %v792_v52  ;;  %v803_v58 = vmul.f32 1.442695, %v801_v53  ;;  %v793_v63 = vmul.f32 1.442695, %v791_v55 }
 0x75e   :  { %2420 = vtanh.f32 %v790_v44  ;;  %v805_v2 = vmul.f32 1.442695, %v802_v62  ;;  %v1928_v52 = vsel %vm1926_vm10, %v2819_v56, %v2871_v18 }
 0x75f   :  { %2422 = vpow2.f32 %v795_v54 }
 0x760   :  { %2424 = vpow2.f32 %v803_v58 }
 0x761   :  { %2426 = vpow2.f32 %v793_v63 }
 0x762   :  { %2428 = vpow2.f32 %v805_v2  ;;  %v1927_v2 = vsel %vm1926_vm10, %v2826_v1, %v2878_v24 }
 0x765   :  { %v2415_v45 = vpop.eup %2414 }
 0x766   :  { %v2417_v47 = vpop.eup %2416  ;;  %825 = vrot.lane.b32.xlu1 %v2415_v45, %s2611_s5 }
 0x767   :  { %853 = vrot.lane.b32.xlu0 %v2417_v47, %s2611_s5  ;;  %v2419_v50 = vpop.eup %2418 }
 0x768   :  { %v2421_v51 = vpop.eup %2420 }
 0x769   :  { %v2423_v4 = vpop.eup %2422 }
 0x76a   :  { %855 = vrot.lane.b32.xlu1 %v2421_v51, %s2611_s5  ;;  %v2425_v5 = vpop.eup %2424  ;;  %v798_v6 = vadd.f32 1.0, %v2423_v4 }
 0x76b   :  { %823 = vrot.lane.b32.xlu0 %v2419_v50, %s2611_s5  ;;  %v807_v7 = vadd.f32 1.0, %v2425_v5  ;;  %v2427_v10 = vpop.eup %2426 }
 0x76c   :  { %v2429_v39 = vpop.eup %2428  ;;  %2430 = vrcp.f32 %v798_v6  ;;  %v797_v11 = vadd.f32 1.0, %v2427_v10 }
 0x76d   :  { %2432 = vrcp.f32 %v807_v7  ;;  %v808_v12 = vadd.f32 1.0, %v2429_v39 }
 0x76e   :  { %2434 = vrcp.f32 %v797_v11 }
 0x76f   :  { %2436 = vrcp.f32 %v808_v12 }
 0x776   :  { %v2431_v14 = vpop.eup %2430 }
 0x777   :  { %v2433_v49 = vpop.eup %2432  ;;  %v818_v30 = vmul.f32 %v2431_v14, %v814_v28 }
 0x778   :  { %v2435_v20 = vpop.eup %2434  ;;  %v847_v32 = vmul.f32 %v2433_v49, %v843_v29 }
 0x779   :  { %v2437_v23 = vpop.eup %2436  ;;  %v817_v38 = vmul.f32 %v2435_v20, %v813_v35 }
 0x77a   :  { %v848_v3 = vmul.f32 %v2437_v23, %v844_v37 }
 0x7d8   :  { %v826_v48 = vpop.permute.xlu1 %825 }
 0x7d9   :  { %v854_v15 = vpop.permute.xlu0 %853  ;;  %v830_v16 = vmul.f32 %v2431_v14, %v826_v48 }
 0x7da   :  { %v859_v17 = vmul.f32 %v2433_v49, %v854_v15 }
 0x7db   :  { %835 = vrot.lane.b32.xlu1 %v830_v16, %s2612_s18 }
 0x7dc   :  { %863 = vrot.lane.b32.xlu0 %v859_v17, %s2612_s18  ;;  %v856_v25 = vpop.permute.xlu1 %855 }
 0x7dd   :  { %v824_v22 = vpop.permute.xlu0 %823  ;;  %v860_v27 = vmul.f32 %v2437_v23, %v856_v25 }
 0x7de   :  { %v829_v26 = vmul.f32 %v2435_v20, %v824_v22 }
 0x7df   :  { %865 = vrot.lane.b32.xlu1 %v860_v27, %s2612_s18 }
 0x7e0   :  { %833 = vrot.lane.b32.xlu0 %v829_v26, %s2612_s18 }
 0x84d   :  { %v836_v31 = vpop.permute.xlu1 %835 }
 0x84e   :  { %v2905_v33 = vadd.f32 %v836_v31, %v818_v30  ;;  %v864_v34 = vpop.permute.xlu0 %863 }
 0x84f   :  { %v2908_v36 = vadd.f32 %v864_v34, %v847_v32 }
 0x850   :  { %2438 = vtanh.f32 %v2905_v33 }
 0x851   :  { %2440 = vtanh.f32 %v2908_v36  ;;  %v866_v9 = vpop.permute.xlu1 %865 }
 0x852   :  { %v834_v40 = vpop.permute.xlu0 %833  ;;  %v2915_v43 = vadd.f32 %v866_v9, %v848_v3 }
 0x853   :  { %v2913_v41 = vadd.f32 %v834_v40, %v817_v38 }
 0x855   :  { %2442 = vtanh.f32 %v2913_v41 }
 0x856   :  { %2444 = vtanh.f32 %v2915_v43 }
 0x85a   :  { %v2439_v42 = vpop.eup %2438 }
 0x85b   :  { %v2441_v44 = vpop.eup %2440  ;;  %877 = vrot.lane.b32.xlu1 %v2439_v42, %s2612_s18 }
 0x85c   :  { %887 = vrot.lane.b32.xlu0 %v2441_v44, %s2612_s18 }
 0x85f   :  { %v2443_v13 = vpop.eup %2442 }
 0x860   :  { %v2445_v45 = vpop.eup %2444  ;;  %875 = vrot.lane.b32.xlu0 %v2443_v13, %s2612_s18 }
 0x861   :  { %889 = vrot.lane.b32.xlu1 %v2445_v45, %s2612_s18 }
 0x8cd   :  { %v878_v47 = vpop.permute.xlu1 %877 }
 0x8ce   :  { %v882_v50 = vmul.f32 %v2431_v14, %v878_v47  ;;  %v888_v51 = vpop.permute.xlu0 %887 }
 0x8cf   :  { %v2929_v54 = vmul.f32 %v2433_v49, %v888_v51 }
 0x8d0   :  { %v2927_v53 = vsel %vm1929_vm11, %v1928_v52, %v882_v50  ;;  %v897_v58 = vrot.slane %v882_v50, 7 }
 0x8d1   :  { %v905_v18 = vrot.slane %v2929_v54, 3 }
 0x8d2   :  { %v876_v55 = vpop.permute.xlu0 %875 }
 0x8d3   :  { %v890_v62 = vpop.permute.xlu1 %889  ;;  %v881_v63 = vmul.f32 %v2435_v20, %v876_v55 }
 0x8d4   :  { %v2934_v4 = vmul.f32 %v2437_v23, %v890_v62 }
 0x8d5   :  { %v2937_v5 = vsel %vm1929_vm11, %v1927_v2, %v881_v63  ;;  %v899_v56 = vsel %vm898_vm12, %v897_v58, %v881_v63 }
 0x8d6   :  { %v906_v6 = vrot.slane %v2934_v4, 2  ;;  %900 = vrot.lane.b32.xlu1 %v899_v56, %s2613_s2 }
 0x8d8   :  { %v907_v7 = vsel %vm898_vm12, %v906_v6, %v905_v18  ;;  %v1020_v18 = vrot.slane %v2905_v33, 7  ;;  %v1049_v6 = vrot.slane %v2908_v36, 1 }
 0x8d9   :  { %908 = vrot.lane.b32.xlu0 %v907_v7, %s2614_s19 }
 0x948   :  { %v901_v10 = vpop.permute.xlu1 %900 }
 0x94b   :  { %v909_v39 = vpop.permute.xlu0 %908 }
 0x94c   :  { %v911_v11 = vsel %vm496_vm7, %v901_v10, %v909_v39 }
 0x94d   :  { %v913_v1 = vrot.slane %v911_v11, 2  ;;  %v1019_v11 = vrot.slane %v2913_v41, 7 }
 0x94f   :  { %2233 = vmatmul.mubr.msk.f32.vlgmr.msra.gmra.mrb[6].mxu0 %vm304_vm8, %v913_v1 }
 0x950   :  { %2329 = vmatpush3.bf16.msra.mxu0 %v2771_v46  ;;  %2246 = vmatprep.mubr.msk.f32.mxu0 %vm2607_vm0, %v2608_v8 }
 0x951   :  { %2333 = vmatprep.subr.bf16.mxu0 %v2606_v0 }
 0xa22   :  { %v982_v24 = vpop.f32.mrb[6].mxu0 }
 0xa23   :  { %v988_v12 = vrot.slane %v982_v24, 6  ;;  %v993_v14 = vrot.slane %v982_v24, 4  ;;  %v2234_v48 = vpop.f32.mrb[7].mxu0  ;;  %v987_v49 = vrot.slane %v982_v24, 5 }
 0xa25   :  { %v992_v15 = vadd.f32 %v988_v12, %v2787_v59  ;;  %v995_v16 = vadd.f32 %v993_v14, %v2789_v61  ;;  %v991_v17 = vadd.f32 %v987_v49, %v2789_v61  ;;  %v996_v20 = vadd.f32 %v987_v49, %v2787_v59 }
 0xa26   :  { %v1050_v14 = vrot.slane %v2915_v43, 1 }
 0xa27   :  { %2446 = vtanh.f32 %v992_v15  ;;  %v998_v26 = vsub.f32 0.0, %v992_v15  ;;  %v1007_v27 = vsub.f32 0.0, %v995_v16  ;;  %v997_v28 = vsub.f32 0.0, %v991_v17 }
 0xa28   :  { %2448 = vtanh.f32 %v995_v16  ;;  %v1008_v31 = vsub.f32 0.0, %v996_v20 }
 0xa29   :  { %2450 = vtanh.f32 %v991_v17  ;;  %v1001_v29 = vmul.f32 1.442695, %v998_v26  ;;  %v1009_v30 = vmul.f32 1.442695, %v1007_v27  ;;  %v999_v32 = vmul.f32 1.442695, %v997_v28 }
 0xa2a   :  { %2452 = vtanh.f32 %v996_v20  ;;  %v1011_v34 = vmul.f32 1.442695, %v1008_v31 }
 0xa2b   :  { %2454 = vpow2.f32 %v1001_v29 }
 0xa2c   :  { %2456 = vpow2.f32 %v1009_v30 }
 0xa2d   :  { %2458 = vpow2.f32 %v999_v32 }
 0xa2e   :  { %2460 = vpow2.f32 %v1011_v34 }
 0xa31   :  { %v2447_v22 = vpop.eup %2446 }
 0xa32   :  { %v2449_v23 = vpop.eup %2448  ;;  %1031 = vrot.lane.b32.xlu1 %v2447_v22, %s2611_s5 }
 0xa33   :  { %1059 = vrot.lane.b32.xlu0 %v2449_v23, %s2611_s5  ;;  %v2451_v0 = vpop.eup %2450 }
 0xa34   :  { %v2453_v25 = vpop.eup %2452 }
 0xa35   :  { %v2455_v35 = vpop.eup %2454 }
 0xa36   :  { %1029 = vrot.lane.b32.xlu1 %v2451_v0, %s2611_s5  ;;  %v2457_v37 = vpop.eup %2456  ;;  %v1004_v38 = vadd.f32 1.0, %v2455_v35 }
 0xa37   :  { %1061 = vrot.lane.b32.xlu0 %v2453_v25, %s2611_s5  ;;  %v2459_v3 = vpop.eup %2458  ;;  %v1013_v40 = vadd.f32 1.0, %v2457_v37 }
 0xa38   :  { %v2461_v9 = vpop.eup %2460  ;;  %v1003_v42 = vadd.f32 1.0, %v2459_v3  ;;  %2462 = vrcp.f32 %v1004_v38 }
 0xa39   :  { %2464 = vrcp.f32 %v1013_v40  ;;  %v1014_v44 = vadd.f32 1.0, %v2461_v9 }
 0xa3a   :  { %2466 = vrcp.f32 %v1003_v42 }
 0xa3b   :  { %2468 = vrcp.f32 %v1014_v44 }
 0xa42   :  { %v2463_v13 = vpop.eup %2462 }
 0xa43   :  { %v2465_v47 = vpop.eup %2464  ;;  %v1024_v7 = vmul.f32 %v2463_v13, %v1020_v18 }
 0xa44   :  { %v2467_v55 = vpop.eup %2466  ;;  %v1053_v10 = vmul.f32 %v2465_v47, %v1049_v6 }
 0xa45   :  { %v2469_v63 = vpop.eup %2468  ;;  %v1023_v48 = vmul.f32 %v2467_v55, %v1019_v11 }
 0xa46   :  { %v1054_v49 = vmul.f32 %v2469_v63, %v1050_v14 }
 0xaa4   :  { %v1032_v45 = vpop.permute.xlu1 %1031 }
 0xaa5   :  { %v1060_v50 = vpop.permute.xlu0 %1059  ;;  %v1036_v51 = vmul.f32 %v2463_v13, %v1032_v45 }
 0xaa6   :  { %v1065_v52 = vmul.f32 %v2465_v47, %v1060_v50 }
 0xaa7   :  { %1041 = vrot.lane.b32.xlu1 %v1036_v51, %s2612_s18 }
 0xaa8   :  { %1069 = vrot.lane.b32.xlu0 %v1065_v52, %s2612_s18  ;;  %v1030_v58 = vpop.permute.xlu1 %1029 }
 0xaa9   :  { %v1035_v62 = vmul.f32 %v2467_v55, %v1030_v58  ;;  %v1062_v2 = vpop.permute.xlu0 %1061 }
 0xaaa   :  { %v1066_v56 = vmul.f32 %v2469_v63, %v1062_v2 }
 0xaab   :  { %1039 = vrot.lane.b32.xlu1 %v1035_v62, %s2612_s18 }
 0xaac   :  { %1071 = vrot.lane.b32.xlu0 %v1066_v56, %s2612_s18 }
 0xb19   :  { %v1042_v39 = vpop.permute.xlu1 %1041 }
 0xb1a   :  { %v1070_v1 = vpop.permute.xlu0 %1069  ;;  %v2964_v24 = vadd.f32 %v1042_v39, %v1024_v7 }
 0xb1b   :  { %v2966_v12 = vadd.f32 %v1070_v1, %v1053_v10 }
 0xb1c   :  { %2470 = vtanh.f32 %v2964_v24 }
 0xb1d   :  { %2472 = vtanh.f32 %v2966_v12  ;;  %v1040_v33 = vpop.permute.xlu1 %1039 }
 0xb1e   :  { %v2971_v36 = vadd.f32 %v1040_v33, %v1023_v48  ;;  %v1072_v15 = vpop.permute.xlu0 %1071 }
 0xb1f   :  { %v2973_v16 = vadd.f32 %v1072_v15, %v1054_v49 }
 0xb20   :  { %2474 = vtanh.f32 %v2971_v36 }
 0xb21   :  { %2476 = vtanh.f32 %v2973_v16 }
 0xb26   :  { %v2471_v41 = vpop.eup %2470 }
 0xb27   :  { %v2473_v17 = vpop.eup %2472  ;;  %1083 = vrot.lane.b32.xlu1 %v2471_v41, %s2612_s18 }
 0xb28   :  { %1093 = vrot.lane.b32.xlu0 %v2473_v17, %s2612_s18 }
 0xb2a   :  { %v2475_v43 = vpop.eup %2474 }
 0xb2b   :  { %1081 = vrot.lane.b32.xlu1 %v2475_v43, %s2612_s18  ;;  %v2477_v20 = vpop.eup %2476 }
 0xb2c   :  { %1095 = vrot.lane.b32.xlu0 %v2477_v20, %s2612_s18 }
 0xb99   :  { %v1084_v22 = vpop.permute.xlu1 %1083 }
 0xb9a   :  { %v1094_v23 = vpop.permute.xlu0 %1093  ;;  %v1088_v0 = vmul.f32 %v2463_v13, %v1084_v22 }
 0xb9b   :  { %v2981_v25 = vmul.f32 %v2465_v47, %v1094_v23 }
 0xb9c   :  { %v2985_v26 = vsel %vm1932_vm13, %v2927_v53, %v1088_v0  ;;  %v1103_v28 = vrot.slane %v1088_v0, 7 }
 0xb9d   :  { %v1082_v27 = vpop.permute.xlu1 %1081  ;;  %v1111_v31 = vrot.slane %v2981_v25, 1 }
 0xb9e   :  { %v1087_v29 = vmul.f32 %v2467_v55, %v1082_v27  ;;  %v1096_v30 = vpop.permute.xlu0 %1095 }
 0xb9f   :  { %v2988_v32 = vmul.f32 %v2469_v63, %v1096_v30 }
 0xba0   :  { %v2992_v34 = vsel %vm1932_vm13, %v2937_v5, %v1087_v29  ;;  %v1105_v35 = vsel %vm1104_vm14, %v1103_v28, %v1087_v29 }
 0xba1   :  { %1106 = vrot.lane.b32.xlu1 %v1105_v35, %s2613_s2  ;;  %v1112_v37 = vsel %vm1104_vm14, %v2988_v32, %v1111_v31 }
 0xba2   :  { %1113 = vrot.lane.b32.xlu0 %v1112_v37, %s2614_s19  ;;  %v1225_v37 = vrot.slane %v2964_v24, 7 }
 0xc13   :  { %v1107_v53 = vpop.permute.xlu1 %1106 }
 0xc14   :  { %v1114_v38 = vpop.permute.xlu0 %1113 }
 0xc15   :  { %v1116_v3 = vsel %vm496_vm7, %v1107_v53, %v1114_v38  ;;  %v1254_v53 = vrot.slane %v2966_v12, 1 }
 0xc16   :  { %v1118_v40 = vrot.slane %v1116_v3, 3 }
 0xc18   :  { %2240 = vmatmul.mubr.msk.f32.vlgmr.msra.gmra.mrb[6].mxu1 %vm304_vm8, %v1118_v40 }
 0xc19   :  { %2332 = vmatpush3.bf16.msra.mxu1 %v2771_v46  ;;  %2253 = vmatprep.mubr.msk.f32.mxu1 %vm2607_vm0, %v2608_v8 }
 0xceb   :  { %v1187_v5 = vpop.f32.mrb[6].mxu1 }
 0xcec   :  { %v1193_v9 = vrot.slane %v1187_v5, 5  ;;  %v2241_v42 = vpop.f32.mrb[7].mxu1  ;;  %v1192_v13 = vrot.slane %v1187_v5, 4  ;;  %v1198_v47 = vrot.slane %v1187_v5, 6 }
 0xced   :  { %v1224_v42 = vrot.slane %v2971_v36, 7 }
 0xcee   :  { %v1197_v44 = vadd.f32 %v1193_v9, %v2787_v59  ;;  %v1200_v45 = vadd.f32 %v1193_v9, %v2789_v61  ;;  %v1196_v50 = vadd.f32 %v1192_v13, %v2789_v61  ;;  %v1201_v51 = vadd.f32 %v1198_v47, %v2787_v59 }
 0xcef   :  { %v1255_v13 = vrot.slane %v2973_v16, 1 }
 0xcf0   :  { %2478 = vtanh.f32 %v1197_v44  ;;  %v1203_v63 = vsub.f32 0.0, %v1197_v44  ;;  %v1212_v2 = vsub.f32 0.0, %v1200_v45  ;;  %v1202_v18 = vsub.f32 0.0, %v1196_v50 }
 0xcf1   :  { %2480 = vtanh.f32 %v1200_v45  ;;  %v1213_v7 = vsub.f32 0.0, %v1201_v51 }
 0xcf2   :  { %2482 = vtanh.f32 %v1196_v50  ;;  %v1206_v56 = vmul.f32 1.442695, %v1203_v63  ;;  %v1214_v6 = vmul.f32 1.442695, %v1212_v2  ;;  %v1204_v10 = vmul.f32 1.442695, %v1202_v18 }
 0xcf3   :  { %2484 = vtanh.f32 %v1201_v51  ;;  %v1216_v39 = vmul.f32 1.442695, %v1213_v7 }
 0xcf4   :  { %2486 = vpow2.f32 %v1206_v56 }
 0xcf5   :  { %2488 = vpow2.f32 %v1214_v6 }
 0xcf6   :  { %2490 = vpow2.f32 %v1204_v10 }
 0xcf7   :  { %2492 = vpow2.f32 %v1216_v39 }
 0xcfa   :  { %v2479_v52 = vpop.eup %2478 }
 0xcfb   :  { %v2481_v55 = vpop.eup %2480  ;;  %1236 = vrot.lane.b32.xlu1 %v2479_v52, %s2611_s5 }
 0xcfc   :  { %1264 = vrot.lane.b32.xlu0 %v2481_v55, %s2611_s5  ;;  %v2483_v58 = vpop.eup %2482 }
 0xcfd   :  { %v2485_v62 = vpop.eup %2484 }
 0xcfe   :  { %v2487_v11 = vpop.eup %2486 }
 0xcff   :  { %1266 = vrot.lane.b32.xlu1 %v2485_v62, %s2611_s5  ;;  %v2489_v1 = vpop.eup %2488  ;;  %v1209_v14 = vadd.f32 1.0, %v2487_v11 }
 0xd00   :  { %1234 = vrot.lane.b32.xlu0 %v2483_v58, %s2611_s5  ;;  %v1218_v48 = vadd.f32 1.0, %v2489_v1  ;;  %v2491_v33 = vpop.eup %2490 }
 0xd01   :  { %v2493_v49 = vpop.eup %2492  ;;  %2494 = vrcp.f32 %v1209_v14  ;;  %v1208_v15 = vadd.f32 1.0, %v2491_v33 }
 0xd02   :  { %2496 = vrcp.f32 %v1218_v48  ;;  %v1219_v41 = vadd.f32 1.0, %v2493_v49 }
 0xd03   :  { %2498 = vrcp.f32 %v1208_v15 }
 0xd04   :  { %2500 = vrcp.f32 %v1219_v41 }
 0xd0b   :  { %v2495_v17 = vpop.eup %2494 }
 0xd0c   :  { %v2497_v20 = vpop.eup %2496  ;;  %v1229_v38 = vmul.f32 %v2495_v17, %v1225_v37 }
 0xd0d   :  { %v2499_v27 = vpop.eup %2498  ;;  %v1258_v40 = vmul.f32 %v2497_v20, %v1254_v53 }
 0xd0e   :  { %v2501_v29 = vpop.eup %2500  ;;  %v1228_v45 = vmul.f32 %v2499_v27, %v1224_v42 }
 0xd0f   :  { %v1259_v24 = vmul.f32 %v2501_v29, %v1255_v13 }
 0xd6d   :  { %v1237_v43 = vpop.permute.xlu1 %1236 }
 0xd6e   :  { %v1265_v22 = vpop.permute.xlu0 %1264  ;;  %v1241_v23 = vmul.f32 %v2495_v17, %v1237_v43 }
 0xd6f   :  { %v1270_v0 = vmul.f32 %v2497_v20, %v1265_v22 }
 0xd70   :  { %1246 = vrot.lane.b32.xlu1 %v1241_v23, %s2612_s18 }
 0xd71   :  { %1274 = vrot.lane.b32.xlu0 %v1270_v0, %s2612_s18  ;;  %v1267_v30 = vpop.permute.xlu1 %1266 }
 0xd72   :  { %v1235_v28 = vpop.permute.xlu0 %1234  ;;  %v1271_v35 = vmul.f32 %v2501_v29, %v1267_v30 }
 0xd73   :  { %v1240_v31 = vmul.f32 %v2499_v27, %v1235_v28 }
 0xd74   :  { %1276 = vrot.lane.b32.xlu1 %v1271_v35, %s2612_s18 }
 0xd75   :  { %1244 = vrot.lane.b32.xlu0 %v1240_v31, %s2612_s18 }
 0xde2   :  { %v1247_v3 = vpop.permute.xlu1 %1246 }
 0xde3   :  { %v3016_v5 = vadd.f32 %v1247_v3, %v1229_v38  ;;  %v1275_v9 = vpop.permute.xlu0 %1274 }
 0xde4   :  { %v3019_v44 = vadd.f32 %v1275_v9, %v1258_v40 }
 0xde5   :  { %2502 = vtanh.f32 %v3016_v5 }
 0xde6   :  { %2504 = vtanh.f32 %v3019_v44  ;;  %v1277_v12 = vpop.permute.xlu1 %1276 }
 0xde7   :  { %v1245_v47 = vpop.permute.xlu0 %1244  ;;  %v3026_v51 = vadd.f32 %v1277_v12, %v1259_v24 }
 0xde8   :  { %v3024_v50 = vadd.f32 %v1245_v47, %v1228_v45 }
 0xdea   :  { %2506 = vtanh.f32 %v3024_v50 }
 0xdeb   :  { %2508 = vtanh.f32 %v3026_v51 }
 0xdef   :  { %v2503_v36 = vpop.eup %2502 }
 0xdf0   :  { %v2505_v52 = vpop.eup %2504  ;;  %1288 = vrot.lane.b32.xlu1 %v2503_v36, %s2612_s18 }
 0xdf1   :  { %1298 = vrot.lane.b32.xlu0 %v2505_v52, %s2612_s18 }
 0xdf4   :  { %v2507_v16 = vpop.eup %2506 }
 0xdf5   :  { %v2509_v55 = vpop.eup %2508  ;;  %1286 = vrot.lane.b32.xlu0 %v2507_v16, %s2612_s18 }
 0xdf6   :  { %1300 = vrot.lane.b32.xlu1 %v2509_v55, %s2612_s18 }
 0xe62   :  { %v1289_v58 = vpop.permute.xlu1 %1288 }
 0xe63   :  { %v1293_v62 = vmul.f32 %v2495_v17, %v1289_v58  ;;  %v1299_v63 = vpop.permute.xlu0 %1298 }
 0xe64   :  { %v3038_v56 = vmul.f32 %v2497_v20, %v1299_v63 }
 0xe65   :  { %v3036_v2 = vsel %vm1935_vm15, %v2985_v26, %v1293_v62  ;;  %v1308_v6 = vrot.slane %v1293_v62, 7 }
 0xe66   :  { %v1316_v14 = vrot.slane %v3038_v56, 7 }
 0xe67   :  { %v1287_v18 = vpop.permute.xlu0 %1286 }
 0xe68   :  { %v1301_v7 = vpop.permute.xlu1 %1300  ;;  %v1292_v10 = vmul.f32 %v2499_v27, %v1287_v18 }
 0xe69   :  { %v3040_v39 = vmul.f32 %v2501_v29, %v1301_v7 }
 0xe6a   :  { %v3044_v11 = vsel %vm1935_vm15, %v2992_v34, %v1292_v10  ;;  %v1310_v1 = vsel %vm1309_vm2, %v1308_v6, %v1292_v10 }
 0xe6b   :  { %v1317_v48 = vrot.slane %v3040_v39, 6  ;;  %1311 = vrot.lane.b32.xlu1 %v1310_v1, %s2613_s2 }
 0xe6d   :  { %v1318_v26 = vsel %vm1309_vm2, %v1317_v48, %v1316_v14 }
 0xe6e   :  { %1319 = vrot.lane.b32.xlu0 %v1318_v26, %s2614_s19 }
 0xedd   :  { %v1312_v33 = vpop.permute.xlu1 %1311 }
 0xee0   :  { %v1320_v49 = vpop.permute.xlu0 %1319 }
 0xee1   :  { %v1322_v15 = vsel %vm496_vm7, %v1312_v33, %v1320_v49  ;;  %v1433_v33 = vrot.slane %v3016_v5, 7  ;;  %v1462_v49 = vrot.slane %v3019_v44, 1 }
 0xee2   :  { %v1324_v41 = vrot.slane %v1322_v15, 4 }
 0xee4   :  { %2247 = vmatmul.mubr.msk.f32.vlgmr.msra.gmra.mrb[8].mxu0 %vm304_vm8, %v1324_v41 }
 0xee5   :  { %2335 = vmatpush3.bf16.msra.mxu0 %v2771_v46  ;;  %2260 = vmatprep.mubr.msk.f32.mxu0 %vm2607_vm0, %v2608_v8  ;;  %vm1938_vm0 = vcmask 1044480  }
 0xfb7   :  { %v1393_v34 = vpop.f32.mrb[8].mxu0 }
 0xfb8   :  { %v1399_v17 = vrot.slane %v1393_v34, 4  ;;  %v1404_v43 = vrot.slane %v1393_v34, 6  ;;  %v2248_v20 = vpop.f32.mrb[9].mxu0  ;;  %v1398_v23 = vrot.slane %v1393_v34, 3  ;;  %v1405_v27 = vrot.slane %v1393_v34, 7 }
 0xfb9   :  { %v1432_v20 = vrot.slane %v3024_v50, 7 }
 0xfba   :  { %v1403_v22 = vadd.f32 %v1399_v17, %v2787_v59  ;;  %v1408_v0 = vadd.f32 %v1404_v43, %v2789_v61  ;;  %v1402_v28 = vadd.f32 %v1398_v23, %v2789_v61  ;;  %v1409_v29 = vadd.f32 %v1405_v27, %v2787_v59 }
 0xfbb   :  { %v1463_v23 = vrot.slane %v3026_v51, 1 }
 0xfbc   :  { %2510 = vtanh.f32 %v1403_v22  ;;  %v1411_v35 = vsub.f32 0.0, %v1403_v22  ;;  %v1420_v37 = vsub.f32 0.0, %v1408_v0  ;;  %v1410_v38 = vsub.f32 0.0, %v1402_v28 }
 0xfbd   :  { %2512 = vtanh.f32 %v1408_v0  ;;  %v1421_v40 = vsub.f32 0.0, %v1409_v29 }
 0xfbe   :  { %2514 = vtanh.f32 %v1402_v28  ;;  %v1414_v53 = vmul.f32 1.442695, %v1411_v35  ;;  %v1422_v3 = vmul.f32 1.442695, %v1420_v37  ;;  %v1412_v9 = vmul.f32 1.442695, %v1410_v38 }
 0xfbf   :  { %2516 = vtanh.f32 %v1409_v29  ;;  %v1424_v42 = vmul.f32 1.442695, %v1421_v40 }
 0xfc0   :  { %2518 = vpow2.f32 %v1414_v53 }
 0xfc1   :  { %2520 = vpow2.f32 %v1422_v3 }
 0xfc2   :  { %2522 = vpow2.f32 %v1412_v9 }
 0xfc3   :  { %2524 = vpow2.f32 %v1424_v42 }
 0xfc6   :  { %v2511_v46 = vpop.eup %2510 }
 0xfc7   :  { %v2513_v8 = vpop.eup %2512  ;;  %1444 = vrot.lane.b32.xlu1 %v2511_v46, %s2611_s5 }
 0xfc8   :  { %1472 = vrot.lane.b32.xlu0 %v2513_v8, %s2611_s5  ;;  %v2515_v30 = vpop.eup %2514 }
 0xfc9   :  { %v2517_v31 = vpop.eup %2516 }
 0xfca   :  { %v2519_v13 = vpop.eup %2518 }
 0xfcb   :  { %1474 = vrot.lane.b32.xlu1 %v2517_v31, %s2611_s5  ;;  %v2521_v45 = vpop.eup %2520  ;;  %v1417_v24 = vadd.f32 1.0, %v2519_v13 }
 0xfcc   :  { %1442 = vrot.lane.b32.xlu0 %v2515_v30, %s2611_s5  ;;  %v1426_v47 = vadd.f32 1.0, %v2521_v45  ;;  %v2523_v12 = vpop.eup %2522 }
 0xfcd   :  { %v2525_v36 = vpop.eup %2524  ;;  %2526 = vrcp.f32 %v1417_v24  ;;  %v1416_v52 = vadd.f32 1.0, %v2523_v12 }
 0xfce   :  { %2528 = vrcp.f32 %v1426_v47  ;;  %v1427_v16 = vadd.f32 1.0, %v2525_v36 }
 0xfcf   :  { %2530 = vrcp.f32 %v1416_v52 }
 0xfd0   :  { %2532 = vrcp.f32 %v1427_v16 }
 0xfd7   :  { %v2527_v55 = vpop.eup %2526 }
 0xfd8   :  { %v2529_v62 = vpop.eup %2528  ;;  %v1437_v15 = vmul.f32 %v2527_v55, %v1433_v33 }
 0xfd9   :  { %v2531_v7 = vpop.eup %2530  ;;  %v1466_v34 = vmul.f32 %v2529_v62, %v1462_v49 }
 0xfda   :  { %v2533_v1 = vpop.eup %2532  ;;  %v1436_v0 = vmul.f32 %v2531_v7, %v1432_v20 }
 0xfdb   :  { %v1467_v5 = vmul.f32 %v2533_v1, %v1463_v23 }
0x1039   :  { %v1445_v58 = vpop.permute.xlu1 %1444 }
0x103a   :  { %v1473_v63 = vpop.permute.xlu0 %1472  ;;  %v1449_v18 = vmul.f32 %v2527_v55, %v1445_v58 }
0x103b   :  { %v1478_v6 = vmul.f32 %v2529_v62, %v1473_v63 }
0x103c   :  { %1454 = vrot.lane.b32.xlu1 %v1449_v18, %s2612_s18 }
0x103d   :  { %1482 = vrot.lane.b32.xlu0 %v1478_v6, %s2612_s18  ;;  %v1475_v14 = vpop.permute.xlu1 %1474 }
0x103e   :  { %v1443_v10 = vpop.permute.xlu0 %1442  ;;  %v1479_v26 = vmul.f32 %v2533_v1, %v1475_v14 }
0x103f   :  { %v1448_v48 = vmul.f32 %v2531_v7, %v1443_v10 }
0x1040   :  { %1484 = vrot.lane.b32.xlu1 %v1479_v26, %s2612_s18 }
0x1041   :  { %1452 = vrot.lane.b32.xlu0 %v1448_v48, %s2612_s18 }
0x10ae   :  { %v1455_v41 = vpop.permute.xlu1 %1454 }
0x10af   :  { %v3069_v17 = vadd.f32 %v1455_v41, %v1437_v15  ;;  %v1483_v43 = vpop.permute.xlu0 %1482 }
0x10b0   :  { %v3072_v22 = vadd.f32 %v1483_v43, %v1466_v34 }
0x10b1   :  { %2534 = vtanh.f32 %v3069_v17 }
0x10b2   :  { %2536 = vtanh.f32 %v3072_v22  ;;  %v1485_v44 = vpop.permute.xlu1 %1484 }
0x10b3   :  { %v1453_v27 = vpop.permute.xlu0 %1452  ;;  %v3079_v29 = vadd.f32 %v1485_v44, %v1467_v5 }
0x10b4   :  { %v3077_v28 = vadd.f32 %v1453_v27, %v1436_v0 }
0x10b6   :  { %2538 = vtanh.f32 %v3077_v28 }
0x10b7   :  { %2540 = vtanh.f32 %v3079_v29 }
0x10bb   :  { %v2535_v50 = vpop.eup %2534 }
0x10bc   :  { %v2537_v46 = vpop.eup %2536  ;;  %1496 = vrot.lane.b32.xlu1 %v2535_v50, %s2612_s18 }
0x10bd   :  { %1506 = vrot.lane.b32.xlu0 %v2537_v46, %s2612_s18 }
0x10c0   :  { %v2539_v51 = vpop.eup %2538 }
0x10c1   :  { %v2541_v8 = vpop.eup %2540  ;;  %1494 = vrot.lane.b32.xlu0 %v2539_v51, %s2612_s18 }
0x10c2   :  { %1508 = vrot.lane.b32.xlu1 %v2541_v8, %s2612_s18 }
0x112e   :  { %v1497_v30 = vpop.permute.xlu1 %1496 }
0x112f   :  { %v1501_v31 = vmul.f32 %v2527_v55, %v1497_v30  ;;  %v1507_v35 = vpop.permute.xlu0 %1506 }
0x1130   :  { %v3091_v53 = vmul.f32 %v2529_v62, %v1507_v35 }
0x1131   :  { %v3089_v37 = vsel %vm1938_vm0, %v3036_v2, %v1501_v31  ;;  %v1516_v3 = vrot.slane %v1501_v31, 7 }
0x1132   :  { %v1524_v24 = vrot.slane %v3091_v53, 5 }
0x1133   :  { %v1495_v38 = vpop.permute.xlu0 %1494 }
0x1134   :  { %v1509_v40 = vpop.permute.xlu1 %1508  ;;  %v1500_v9 = vmul.f32 %v2531_v7, %v1495_v38 }
0x1135   :  { %v3093_v42 = vmul.f32 %v2533_v1, %v1509_v40 }
0x1136   :  { %v3097_v13 = vsel %vm1938_vm0, %v3044_v11, %v1500_v9  ;;  %v1518_v45 = vsel %vm1517_vm3, %v1516_v3, %v1500_v9 }
0x1137   :  { %v1525_v47 = vrot.slane %v3093_v42, 4  ;;  %1519 = vrot.lane.b32.xlu1 %v1518_v45, %s2613_s2 }
0x1139   :  { %v1526_v2 = vsel %vm1517_vm3, %v1525_v47, %v1524_v24 }
0x113a   :  { %1527 = vrot.lane.b32.xlu0 %v1526_v2, %s2614_s19 }
0x11a9   :  { %v1520_v12 = vpop.permute.xlu1 %1519 }
0x11ac   :  { %v1528_v36 = vpop.permute.xlu0 %1527 }
0x11ad   :  { %v1530_v52 = vsel %vm496_vm7, %v1520_v12, %v1528_v36  ;;  %v1640_v36 = vrot.slane %v3069_v17, 7 }
0x11ae   :  { %v1532_v16 = vrot.slane %v1530_v52, 5 }
0x11b0   :  { %2254 = vmatmul.mubr.msk.f32.vlgmr.msra.gmra.mrb[8].mxu1 %vm304_vm8, %v1532_v16 }
0x1283   :  { %v1601_v55 = vpop.f32.mrb[8].mxu1 }
0x1284   :  { %v1607_v11 = vrot.slane %v1601_v55, 3  ;;  %v2255_v58 = vpop.f32.mrb[9].mxu1  ;;  %v1612_v63 = vrot.slane %v1601_v55, 7  ;;  %v1616_v18 = vadd.f32 %v1601_v55, %v2787_v59  ;;  %v1606_v6 = vrot.slane %v1601_v55, 2 }
0x1285   :  { %v1669_v55 = vrot.slane %v3072_v22, 1 }
0x1286   :  { %v1611_v62 = vadd.f32 %v1607_v11, %v2787_v59  ;;  %v1615_v7 = vadd.f32 %v1612_v63, %v2789_v61  ;;  %v1610_v10 = vadd.f32 %v1606_v6, %v2789_v61  ;;  %v1628_v49 = vsub.f32 0.0, %v1616_v18 }
0x1287   :  { %v1670_v11 = vrot.slane %v3079_v29, 1 }
0x1288   :  { %2542 = vtanh.f32 %v1611_v62  ;;  %v1618_v33 = vsub.f32 0.0, %v1611_v62  ;;  %v1627_v41 = vsub.f32 0.0, %v1615_v7  ;;  %v1631_v34 = vmul.f32 1.442695, %v1628_v49 }
0x1289   :  { %2544 = vtanh.f32 %v1616_v18  ;;  %v1617_v43 = vsub.f32 0.0, %v1610_v10 }
0x128a   :  { %2546 = vtanh.f32 %v1615_v7  ;;  %v1621_v15 = vmul.f32 1.442695, %v1618_v33  ;;  %v1629_v20 = vmul.f32 1.442695, %v1627_v41  ;;  %v1639_v7 = vrot.slane %v3077_v28, 7 }
0x128b   :  { %2548 = vtanh.f32 %v1610_v10  ;;  %v1619_v23 = vmul.f32 1.442695, %v1617_v43 }
0x128c   :  { %2550 = vpow2.f32 %v1621_v15 }
0x128d   :  { %2552 = vpow2.f32 %v1631_v34 }
0x128e   :  { %2554 = vpow2.f32 %v1629_v20 }
0x128f   :  { %2556 = vpow2.f32 %v1619_v23 }
0x1292   :  { %v2543_v1 = vpop.eup %2542 }
0x1293   :  { %1651 = vrot.lane.b32.xlu1 %v2543_v1, %s2611_s5  ;;  %v2545_v14 = vpop.eup %2544 }
0x1294   :  { %v2547_v48 = vpop.eup %2546 }
0x1295   :  { %1679 = vrot.lane.b32.xlu0 %v2547_v48, %s2611_s5  ;;  %v2549_v26 = vpop.eup %2548 }
0x1296   :  { %v2551_v0 = vpop.eup %2550 }
0x1297   :  { %1681 = vrot.lane.b32.xlu1 %v2545_v14, %s2611_s5  ;;  %v2553_v5 = vpop.eup %2552  ;;  %v1624_v27 = vadd.f32 1.0, %v2551_v0 }
0x1298   :  { %v2555_v44 = vpop.eup %2554  ;;  %v1634_v50 = vadd.f32 1.0, %v2553_v5 }
0x1299   :  { %1649 = vrot.lane.b32.xlu0 %v2549_v26, %s2611_s5  ;;  %2558 = vrcp.f32 %v1624_v27  ;;  %v1633_v46 = vadd.f32 1.0, %v2555_v44  ;;  %v2557_v51 = vpop.eup %2556 }
0x129a   :  { %2560 = vrcp.f32 %v1634_v50  ;;  %v1623_v8 = vadd.f32 1.0, %v2557_v51 }
0x129b   :  { %2562 = vrcp.f32 %v1633_v46 }
0x129c   :  { %2564 = vrcp.f32 %v1623_v8 }
0x12a3   :  { %v2559_v30 = vpop.eup %2558 }
0x12a4   :  { %v2561_v38 = vpop.eup %2560  ;;  %v1644_v52 = vmul.f32 %v2559_v30, %v1640_v36 }
0x12a5   :  { %v2563_v3 = vpop.eup %2562  ;;  %v1674_v63 = vmul.f32 %v2561_v38, %v1670_v11 }
0x12a6   :  { %v2565_v47 = vpop.eup %2564  ;;  %v1673_v62 = vmul.f32 %v2563_v3, %v1669_v55 }
0x12a7   :  { %v1643_v17 = vmul.f32 %v2565_v47, %v1639_v7 }
0x1305   :  { %v1652_v31 = vpop.permute.xlu1 %1651 }
0x1306   :  { %v1656_v35 = vmul.f32 %v2559_v30, %v1652_v31 }
0x1307   :  { %v1680_v40 = vpop.permute.xlu0 %1679 }
0x1308   :  { %1661 = vrot.lane.b32.xlu1 %v1656_v35, %s2612_s18  ;;  %v1685_v45 = vmul.f32 %v2563_v3, %v1680_v40 }
0x1309   :  { %v1682_v9 = vpop.permute.xlu1 %1681 }
0x130a   :  { %v1686_v24 = vmul.f32 %v2561_v38, %v1682_v9  ;;  %1689 = vrot.lane.b32.xlu0 %v1685_v45, %s2612_s18 }
0x130b   :  { %v1650_v2 = vpop.permute.xlu0 %1649 }
0x130c   :  { %1691 = vrot.lane.b32.xlu1 %v1686_v24, %s2612_s18  ;;  %v1655_v12 = vmul.f32 %v2565_v47, %v1650_v2 }
0x130e   :  { %1659 = vrot.lane.b32.xlu0 %v1655_v12, %s2612_s18 }
0x137a   :  { %v1662_v16 = vpop.permute.xlu1 %1661 }
0x137b   :  { %v3120_v58 = vadd.f32 %v1662_v16, %v1644_v52 }
0x137c   :  { %v1690_v18 = vpop.permute.xlu0 %1689 }
0x137d   :  { %2566 = vtanh.f32 %v3120_v58  ;;  %v3124_v10 = vadd.f32 %v1690_v18, %v1673_v62 }
0x137e   :  { %v1692_v6 = vpop.permute.xlu1 %1691 }
0x137f   :  { %v3126_v1 = vadd.f32 %v1692_v6, %v1674_v63  ;;  %2568 = vtanh.f32 %v3124_v10 }
0x1380   :  { %v1660_v22 = vpop.permute.xlu0 %1659 }
0x1381   :  { %2570 = vtanh.f32 %v3126_v1  ;;  %v3130_v29 = vadd.f32 %v1660_v22, %v1643_v17 }
0x1383   :  { %2572 = vtanh.f32 %v3130_v29 }
0x1387   :  { %v2567_v14 = vpop.eup %2566 }
0x1388   :  { %1703 = vrot.lane.b32.xlu1 %v2567_v14, %s2612_s18 }
0x1389   :  { %v2569_v48 = vpop.eup %2568 }
0x138a   :  { %1713 = vrot.lane.b32.xlu0 %v2569_v48, %s2612_s18 }
0x138b   :  { %v2571_v26 = vpop.eup %2570 }
0x138c   :  { %1715 = vrot.lane.b32.xlu1 %v2571_v26, %s2612_s18 }
0x138d   :  { %v2573_v28 = vpop.eup %2572 }
0x138e   :  { %1701 = vrot.lane.b32.xlu0 %v2573_v28, %s2612_s18 }
0x13fa   :  { %v1704_v33 = vpop.permute.xlu1 %1703 }
0x13fb   :  { %v1708_v49 = vmul.f32 %v2559_v30, %v1704_v33 }
0x13fc   :  { %v1714_v41 = vpop.permute.xlu0 %1713 }
0x13fd   :  { %v3139_v15 = vsel %vm225_vm1, %v3089_v37, %v1708_v49  ;;  %v3141_v34 = vmul.f32 %v2563_v3, %v1714_v41  ;;  %v1723_v27 = vrot.slane %v1708_v49, 7 }
0x13fe   :  { %v1716_v43 = vpop.permute.xlu1 %1715 }
0x13ff   :  { %v3143_v20 = vmul.f32 %v2561_v38, %v1716_v43  ;;  %v1731_v23 = vrot.slane %v3141_v34, 3 }
0x1400   :  { %v1702_v5 = vpop.permute.xlu0 %1701 }
0x1401   :  { %v1732_v0 = vrot.slane %v3143_v20, 2  ;;  %v1707_v44 = vmul.f32 %v2565_v47, %v1702_v5 }
0x1403   :  { %v1733_v50 = vsel %vm1724_vm4, %v1732_v0, %v1731_v23  ;;  %v3149_v46 = vsel %vm225_vm1, %v3097_v13, %v1707_v44  ;;  %v1725_v37 = vsel %vm1724_vm4, %v1723_v27, %v1707_v44 }
0x1404   :  { %1734 = vrot.lane.b32.xlu0 %v1733_v50, %s2614_s19  ;;  %1726 = vrot.lane.b32.xlu1 %v1725_v37, %s2613_s2 }
0x1476   :  { %v1735_v51 = vpop.permute.xlu0 %1734  ;;  %v1727_v8 = vpop.permute.xlu1 %1726 }
0x1477   :  { %v1737_v30 = vsel %vm496_vm7, %v1727_v8, %v1735_v51  ;;  %v1874_v51 = vrot.slane %v3124_v10, 1 }
0x1478   :  { %v1739_v31 = vrot.slane %v1737_v30, 6 }
0x147a   :  { %2261 = vmatmul.mubr.msk.f32.vlgmr.msra.gmra.mrb[10].mxu0 %vm304_vm8, %v1739_v31  ;;  %v1844_v31 = vrot.slane %v3130_v29, 7 }
0x154d   :  { %v1808_v35 = vpop.f32.mrb[10].mxu0 }
0x154e   :  { %v1813_v38 = vrot.slane %v1808_v35, 1  ;;  %v1820_v3 = vadd.f32 %v1808_v35, %v2789_v61  ;;  %v2262_v40 = vpop.f32.mrb[11].mxu0  ;;  %v1814_v9 = vrot.slane %v1808_v35, 2 }
0x154f   :  { %v1875_v40 = vrot.slane %v3126_v1, 1 }
0x1550   :  { %v1817_v13 = vadd.f32 %v1813_v38, %v2789_v61  ;;  %2574 = vtanh.f32 %v1820_v3  ;;  %v1821_v45 = vadd.f32 %v1813_v38, %v2787_v59  ;;  %v1818_v24 = vadd.f32 %v1814_v9, %v2787_v59 }
0x1551   :  { %v1832_v61 = vsub.f32 0.0, %v1820_v3 }
0x1552   :  { %2576 = vtanh.f32 %v1817_v13  ;;  %v1822_v52 = vsub.f32 0.0, %v1817_v13  ;;  %v1833_v11 = vsub.f32 0.0, %v1821_v45  ;;  %v1823_v59 = vsub.f32 0.0, %v1818_v24 }
0x1553   :  { %2578 = vtanh.f32 %v1821_v45  ;;  %v1834_v16 = vmul.f32 1.442695, %v1832_v61 }
0x1554   :  { %2580 = vtanh.f32 %v1818_v24  ;;  %v1824_v55 = vmul.f32 1.442695, %v1822_v52  ;;  %v1836_v62 = vmul.f32 1.442695, %v1833_v11  ;;  %v1826_v63 = vmul.f32 1.442695, %v1823_v59 }
0x1555   :  { %2582 = vpow2.f32 %v1834_v16  ;;  %v1845_v24 = vrot.slane %v3120_v58, 7  ;;  %v60_v58 = vld [vmem:[%s3236_s6] sm:$0xff]  ;;  %v61_v52 = vld [vmem:[%s3236_s6 + $0x8] sm:$0xff] }
0x1556   :  { %2584 = vpow2.f32 %v1824_v55  ;;  %v2336_v16 = vpack.c.bf16 %v61_v52, %v60_v58 }
0x1557   :  { %2586 = vpow2.f32 %v1836_v62 }
0x1558   :  { %2588 = vpow2.f32 %v1826_v63  ;;  %2337 = vmatprep.subr.bf16.mxu1 %v2336_v16 }
0x1559   :  { %2339 = vmatpush3.bf16.msra.mxu1 %v2336_v16 }
0x155a   :  { %v2575_v47 = vpop.eup %2574 }
0x155b   :  { %1884 = vrot.lane.b32.xlu1 %v2575_v47, %s2611_s5 }
0x155c   :  { %v2577_v2 = vpop.eup %2576 }
0x155d   :  { %v2579_v12 = vpop.eup %2578 }
0x155e   :  { %1886 = vrot.lane.b32.xlu0 %v2579_v12, %s2611_s5  ;;  %v2581_v36 = vpop.eup %2580 }
0x155f   :  { %1854 = vrot.lane.b32.xlu1 %v2577_v2, %s2611_s5  ;;  %v2583_v18 = vpop.eup %2582 }
0x1560   :  { %v1838_v6 = vadd.f32 1.0, %v2583_v18  ;;  %v2585_v7 = vpop.eup %2584 }
0x1561   :  { %v1828_v17 = vadd.f32 1.0, %v2585_v7  ;;  %v2587_v22 = vpop.eup %2586 }
0x1562   :  { %1856 = vrot.lane.b32.xlu0 %v2581_v36, %s2611_s5  ;;  %2590 = vrcp.f32 %v1838_v6  ;;  %v1839_v14 = vadd.f32 1.0, %v2587_v22  ;;  %v2589_v48 = vpop.eup %2588 }
0x1563   :  { %2592 = vrcp.f32 %v1828_v17  ;;  %v1829_v26 = vadd.f32 1.0, %v2589_v48 }
0x1564   :  { %2594 = vrcp.f32 %v1839_v14 }
0x1565   :  { %2596 = vrcp.f32 %v1829_v26 }
0x156c   :  { %v2591_v28 = vpop.eup %2590 }
0x156d   :  { %v2593_v41 = vpop.eup %2592  ;;  %v1878_v8 = vmul.f32 %v2591_v28, %v1874_v51 }
0x156e   :  { %v2595_v0 = vpop.eup %2594  ;;  %v1848_v38 = vmul.f32 %v2593_v41, %v1844_v31 }
0x156f   :  { %v2597_v44 = vpop.eup %2596  ;;  %v1879_v9 = vmul.f32 %v2595_v0, %v1875_v40 }
0x1570   :  { %v1849_v2 = vmul.f32 %v2597_v44, %v1845_v24 }
0x15cd   :  { %v1885_v33 = vpop.permute.xlu1 %1884 }
0x15ce   :  { %v1890_v49 = vmul.f32 %v2591_v28, %v1885_v33 }
0x15d0   :  { %1894 = vrot.lane.b32.xlu1 %v1890_v49, %s2612_s18  ;;  %v1887_v5 = vpop.permute.xlu0 %1886 }
0x15d1   :  { %v1855_v43 = vpop.permute.xlu1 %1854  ;;  %v1891_v27 = vmul.f32 %v2595_v0, %v1887_v5 }
0x15d2   :  { %v1860_v23 = vmul.f32 %v2593_v41, %v1855_v43 }
0x15d3   :  { %1896 = vrot.lane.b32.xlu0 %v1891_v27, %s2612_s18 }
0x15d4   :  { %1864 = vrot.lane.b32.xlu1 %v1860_v23, %s2612_s18  ;;  %v1857_v50 = vpop.permute.xlu0 %1856 }
0x15d5   :  { %v1861_v37 = vmul.f32 %v2597_v44, %v1857_v50 }
0x15d7   :  { %1866 = vrot.lane.b32.xlu0 %v1861_v37, %s2612_s18 }
0x1642   :  { %v1895_v30 = vpop.permute.xlu1 %1894 }
0x1643   :  { %v1900_v35 = vadd.f32 %v1895_v30, %v1878_v8 }
0x1645   :  { %2598 = vtanh.f32 %v1900_v35  ;;  %v1897_v45 = vpop.permute.xlu0 %1896 }
0x1646   :  { %v1865_v3 = vpop.permute.xlu1 %1864  ;;  %v1901_v47 = vadd.f32 %v1897_v45, %v1879_v9 }
0x1647   :  { %v1870_v13 = vadd.f32 %v1865_v3, %v1848_v38 }
0x1649   :  { %2600 = vtanh.f32 %v1870_v13  ;;  %v1867_v10 = vpop.permute.xlu0 %1866 }
0x164a   :  { %2602 = vtanh.f32 %v1901_v47  ;;  %v1871_v36 = vadd.f32 %v1867_v10, %v1849_v2 }
0x164c   :  { %2604 = vtanh.f32 %v1871_v36 }
0x164f   :  { %v2599_v12 = vpop.eup %2598 }
0x1650   :  { %1918 = vrot.lane.b32.xlu1 %v2599_v12, %s2612_s18 }
0x1653   :  { %v2601_v29 = vpop.eup %2600 }
0x1654   :  { %1906 = vrot.lane.b32.xlu1 %v2601_v29, %s2612_s18  ;;  %v2603_v61 = vpop.eup %2602 }
0x1655   :  { %1920 = vrot.lane.b32.xlu0 %v2603_v61, %s2612_s18 }
0x1656   :  { %v2605_v1 = vpop.eup %2604 }
0x1659   :  { %1908 = vrot.lane.b32.xlu0 %v2605_v1, %s2612_s18 }
0x16c2   :  { %v1919_v55 = vpop.permute.xlu1 %1918 }
0x16c3   :  { %v1924_v11 = vmul.f32 %v2591_v28, %v1919_v55 }
0x16c5   :  { %v1946_v59 = vsel %vm1926_vm10, %v1924_v11, %v3141_v34 }
0x16c6   :  { %v1948_v62 = vsel %vm1929_vm11, %v1946_v59, %v3091_v53  ;;  %v1907_v63 = vpop.permute.xlu1 %1906 }
0x16c7   :  { %v1950_v18 = vsel %vm1932_vm13, %v1948_v62, %v3038_v56  ;;  %v1912_v6 = vmul.f32 %v2593_v41, %v1907_v63  ;;  %v1921_v14 = vpop.permute.xlu0 %1920 }
0x16c8   :  { %v1952_v7 = vsel %vm1935_vm15, %v1950_v18, %v2981_v25  ;;  %v1925_v34 = vmul.f32 %v2595_v0, %v1921_v14 }
0x16c9   :  { %v1944_v17 = vsel %vm1943_vm5, %v3149_v46, %v1912_v6  ;;  %v1954_v22 = vsel %vm1938_vm0, %v1952_v7, %v2929_v54 }
0x16ca   :  { %1962 = vrot.lane.b32.xlu1 %v1944_v17, %s2613_s2  ;;  %v1956_v53 = vsel %vm225_vm1, %v1954_v22, %v2873_v19  ;;  %v1947_v25 = vsel %vm1926_vm10, %v1925_v34, %v3143_v20 }
0x16cb   :  { %v1958_v56 = vsel %vm1943_vm5, %v1956_v53, %v2821_v57  ;;  %v1949_v46 = vsel %vm1929_vm11, %v1947_v25, %v3093_v42  ;;  %v1909_v48 = vpop.permute.xlu0 %1908 }
0x16cc   :  { %1970 = vrot.lane.b32.xlu0 %v1958_v56, %s2614_s19  ;;  %v1951_v54 = vsel %vm1932_vm13, %v1949_v46, %v3040_v39  ;;  %v1913_v26 = vmul.f32 %v2597_v44, %v1909_v48 }
0x16cd   :  { %v1953_v19 = vsel %vm1935_vm15, %v1951_v54, %v2988_v32 }
0x16ce   :  { %v1945_v28 = vsel %vm1943_vm5, %v3139_v15, %v1913_v26  ;;  %v1955_v57 = vsel %vm1938_vm0, %v1953_v19, %v2934_v4 }
0x16cf   :  { %1964 = vrot.lane.b32.xlu1 %v1945_v28, %s2613_s2  ;;  %v1957_v20 = vsel %vm225_vm1, %v1955_v57, %v2875_v21  ;;  %v2085_v21 = vld [vmem:[%s3237_s7] ss:$0 sm:$0xff]  ;;  %vm2065_vm1 = vcmask 31744  }
0x16d0   :  { %v1959_v42 = vsel %vm1943_vm5, %v1957_v20, %v2823_v60 }
0x16d1   :  { %1972 = vrot.lane.b32.xlu0 %v1959_v42, %s2614_s19 }
0x173c   :  { %v1963_v39 = vpop.permute.xlu1 %1962 }
0x173e   :  { %v1971_v33 = vpop.permute.xlu0 %1970 }
0x173f   :  { %v1976_v32 = vsel %vm496_vm7, %v1963_v39, %v1971_v33 }
0x1740   :  { %2267 = vmatprep.mubr.msk.f32.mxu1 %vm304_vm8, %v1976_v32 }
0x1741   :  { %v1965_v15 = vpop.permute.xlu1 %1964 }
0x1743   :  { %v1973_v49 = vpop.permute.xlu0 %1972 }
0x1744   :  { %v1977_v4 = vsel %vm496_vm7, %v1965_v15, %v1973_v49 }
0x1745   :  { %2268 = vmatmul.mubr.msk.f32.vlgmr.msra.gmra.mrb[10].mxu1 %vm304_vm8, %v1977_v4 }
0x1818   :  { %v2269_v41 = vpop.f32.mrb[10].mxu1 }
0x1819   :  { %v2062_v60 = vadd.f32 %v2269_v41, %v2085_v21  ;;  %v2056_v43 = vpop.f32.mrb[11].mxu1 }
0x181a   :  { %v2057_v23 = vadd.f32 %v2085_v21, %v2056_v43 }
0x181b   :  { %2067 = vst.msk [vmem:[%s3238_s8 + $0x8] sm:$0xff] %vm2065_vm1, %v2062_v60 }
0x181c   :  { %2066 = vst.msk [vmem:[%s3238_s8] sm:$0xff] %vm2065_vm1, %v2057_v23 }

</bundles_post_ra>
